<compile_context>
chip_gen: v7x
topology: tpu7x:2x2x1
jax: 0.10.0
libtpu: 0.0.40
codegen_flags: <defaults>
</compile_context>

<pallas_src>
import functools

import numpy as np
import jax
import jax.numpy as jnp
from jax.experimental import pallas as pl
from jax.experimental.pallas import tpu as pltpu


def _round_up(x, m):
    return ((x + m - 1) // m) * m


def _triplet_loss_kernel(e_ref, a_ref, p_ref, n_ref, out_ref, d2_ref, acc_ref,
                         *, margin, num_triplets, tile_t, b_pad):
    """Grid step i processes triplets [i*tile_t, (i+1)*tile_t)."""
    i = pl.program_id(0)

    # ---- step 0: build the pairwise squared-distance table on the MXU and
    # zero the per-row loss accumulator.  Both persist across grid steps.
    @pl.when(i == 0)
    def _():
        e = e_ref[...]                                        # [Bp, Dp] f32
        et = e.T                                              # [Dp, Bp]
        g = jnp.dot(e, et, preferred_element_type=jnp.float32)   # [Bp, Bp]
        n2_col = jnp.sum(e * e, axis=1, keepdims=True)        # [Bp, 1]
        n2_row = jnp.sum(et * et, axis=0, keepdims=True)      # [1, Bp]
        d2_ref[...] = jnp.maximum(n2_col + n2_row - 2.0 * g, 0.0)
        acc_ref[...] = jnp.zeros_like(acc_ref)

    # ---- build one-hot index matrices for this tile of triplets.
    col = jax.lax.broadcasted_iota(jnp.int32, (tile_t, b_pad), 1)
    oh_a = (a_ref[...] == col).astype(jnp.float32)            # [Tt, Bp]
    oh_p = (p_ref[...] == col).astype(jnp.float32)
    oh_n = (n_ref[...] == col).astype(jnp.float32)

    # ---- gather squared distances from the resident table via MXU matmuls:
    # rows_a[t, :] = D2[a_t, :], rows_p[t, :] = D2[p_t, :]
    d2 = d2_ref[...]
    rows_a = jnp.dot(oh_a, d2, preferred_element_type=jnp.float32)
    rows_p = jnp.dot(oh_p, d2, preferred_element_type=jnp.float32)

    d2_ap = jnp.sum(rows_a * oh_p, axis=-1, keepdims=True)    # [Tt, 1]
    d2_an = jnp.sum(rows_a * oh_n, axis=-1, keepdims=True)
    d2_pn = jnp.sum(rows_p * oh_n, axis=-1, keepdims=True)

    ap = jnp.sqrt(d2_ap)
    # min(sqrt(x), sqrt(y)) == sqrt(min(x, y)); saves one EUP sqrt.
    an_pn = jnp.sqrt(jnp.minimum(d2_an, d2_pn))
    losses = jnp.maximum(ap - an_pn + jnp.float32(margin), 0.0)

    # ---- mask padded triplet rows, accumulate per-row partials in VMEM.
    row_ids = i * tile_t + jax.lax.broadcasted_iota(jnp.int32, (tile_t, 1), 0)
    losses = jnp.where(row_ids < num_triplets, losses, 0.0)
    acc_ref[...] += losses

    # ---- finalize: one cross-sublane reduce + divide + SMEM store.
    @pl.when(i == pl.num_programs(0) - 1)
    def _():
        out_ref[0, 0] = jnp.sum(acc_ref[...]) / jnp.float32(num_triplets)


def _all_triplets(labels_np):
    """Deterministic 'all valid triplets' selector (host-side glue).

    Returns an (T, 3) int32 array of (anchor, positive, negative) indices:
    every ordered pair (a, p) with a != p and label[a] == label[p], combined
    with every n such that label[n] != label[a].
    """
    # TODO(synk): the triplet_selector is an injected host-side object in the
    # PyTorch module; this deterministic "all valid triplets" selector stands
    # in for it to produce the (T, 3) index array consumed by the kernel.
    labels_np = np.asarray(labels_np)
    B = labels_np.shape[0]
    trips = []
    for a in range(B):
        for p in range(B):
            if a == p or labels_np[a] != labels_np[p]:
                continue
            for n in range(B):
                if labels_np[n] == labels_np[a]:
                    continue
                trips.append((a, p, n))
    return np.asarray(trips, dtype=np.int32).reshape(-1, 3)


def online_triplet_loss_v3(embeddings, target, margin=1.0, max_tile_t=512):
    """Forward pass of OnlineTripletLossV3.  Returns (mean_loss, num_triplets)."""
    triplets = _all_triplets(np.asarray(target))
    T = int(triplets.shape[0])
    if T == 0:
        # torch mean over an empty tensor is NaN.
        return jnp.float32(jnp.nan), 0

    B, D = embeddings.shape
    # Lane-dense padding: Bp, Dp multiples of 128 (zero rows/cols are inert for
    # the Gram matmul and are never indexed by the selector).
    b_pad = _round_up(max(B, 1), 128)
    d_pad = _round_up(max(D, 1), 128)

    # Adaptive triplet tile: only pad T up to the sublane granule (8) when T is
    # small, up to max_tile_t when T is large.  Avoids doing masked work on
    # hundreds of padded rows for small triplet counts.
    tile_t = min(int(max_tile_t), _round_up(T, 8))
    t_pad = _round_up(T, tile_t)

    e_pad = jnp.zeros((b_pad, d_pad), jnp.float32)
    e_pad = e_pad.at[:B, :D].set(embeddings.astype(jnp.float32))

    idx_pad = np.zeros((t_pad, 3), dtype=np.int32)   # pad rows masked in-kernel
    idx_pad[:T] = triplets
    a_idx = jnp.asarray(idx_pad[:, 0:1])             # [Tp, 1] int32
    p_idx = jnp.asarray(idx_pad[:, 1:2])
    n_idx = jnp.asarray(idx_pad[:, 2:3])

    kernel = functools.partial(
        _triplet_loss_kernel,
        margin=float(margin),
        num_triplets=T,
        tile_t=tile_t,
        b_pad=b_pad,
    )

    grid = (t_pad // tile_t,)
    e_spec = pl.BlockSpec((b_pad, d_pad), lambda i: (0, 0))   # resident, no re-DMA
    idx_spec = pl.BlockSpec((tile_t, 1), lambda i: (i, 0))

    mean_loss = pl.pallas_call(
        kernel,
        out_shape=jax.ShapeDtypeStruct((1, 1), jnp.float32),
        grid_spec=pltpu.PrefetchScalarGridSpec(
            num_scalar_prefetch=0,
            grid=grid,
            in_specs=[e_spec, idx_spec, idx_spec, idx_spec],
            out_specs=pl.BlockSpec(memory_space=pltpu.SMEM),
            scratch_shapes=[
                pltpu.VMEM((b_pad, b_pad), jnp.float32),   # D2 table (persists)
                pltpu.VMEM((tile_t, 1), jnp.float32),      # per-row loss accum
            ],
        ),
        compiler_params=pltpu.CompilerParams(
            dimension_semantics=("arbitrary",),            # sequential accumulation
        ),
    )(e_pad, a_idx, p_idx, n_idx)

    return mean_loss[0, 0], T


def _reference(embeddings, target, margin=1.0):
    """Pure-JAX reference mirroring the PyTorch forward."""
    triplets = _all_triplets(np.asarray(target))
    a = embeddings[triplets[:, 0]]
    p = embeddings[triplets[:, 1]]
    n = embeddings[triplets[:, 2]]
    ap = jnp.sqrt(jnp.sum((a - p) ** 2, axis=-1))
    an = jnp.sqrt(jnp.sum((a - n) ** 2, axis=-1))
    pn = jnp.sqrt(jnp.sum((p - n) ** 2, axis=-1))
    losses = jax.nn.relu(ap - jnp.minimum(an, pn) + margin)
    return jnp.mean(losses), triplets.shape[0]


if __name__ == "__main__":
    key = jax.random.PRNGKey(0)
    B, D = 8, 32            # batch of 8 embeddings, embedding dim 32
    margin = 1.0

    embeddings = jax.random.normal(key, (B, D), dtype=jnp.float32)
    # two classes of 4 -> 96 valid triplets
    target = jnp.array([0, 0, 0, 0, 1, 1, 1, 1], dtype=jnp.int32)

    loss, n_triplets = online_triplet_loss_v3(embeddings, target, margin=margin)
    loss = jax.block_until_ready(loss)

    ref_loss, ref_n = _reference(embeddings, target, margin=margin)
    assert n_triplets == ref_n
    assert np.allclose(np.asarray(loss), np.asarray(ref_loss),
                       rtol=1e-4, atol=1e-4), (loss, ref_loss)

    print("KERNEL_OK")
</pallas_src>

<mosaic_0001>
module attributes {stable_mosaic.version = 11 : i64} {
  func.func @_triplet_loss_kernel(%arg0: i32, %arg1: memref<128x128xf32, #tpu.memory_space<vmem>>, %arg2: memref<96x1xi32, #tpu.memory_space<vmem>>, %arg3: memref<96x1xi32, #tpu.memory_space<vmem>>, %arg4: memref<96x1xi32, #tpu.memory_space<vmem>>, %arg5: memref<1x1xf32, #tpu.memory_space<smem>>, %arg6: memref<128x128xf32, #tpu.memory_space<vmem>>, %arg7: memref<96x1xf32, #tpu.memory_space<vmem>>) attributes {dimension_semantics = [#tpu.dimension_semantics<arbitrary>], iteration_bounds = array<i64: 1>, scalar_prefetch = 0 : i64, scratch_operands = 2 : i64, tpu.core_type = #tpu.core_type<tc>, window_params = [{pipeline_mode = #tpu.pipeline_mode<synchronous>, transform_indices = @transform_0, window_bounds = array<i64: 128, 128>}, {transform_indices = @transform_1, window_bounds = array<i64: 96, 1>}, {transform_indices = @transform_2, window_bounds = array<i64: 96, 1>}, {transform_indices = @transform_3, window_bounds = array<i64: 96, 1>}, {transform_indices = @transform_4, window_bounds = array<i64: 1, 1>}]} {
    %c0_i32 = arith.constant 0 : i32
    %0 = arith.cmpi eq, %arg0, %c0_i32 : i32
    %1 = arith.extui %0 : i1 to i32
    %c0_i32_0 = arith.constant 0 : i32
    %2 = arith.cmpi ne, %1, %c0_i32_0 : i32
    scf.if %2 {
      %c0_22 = arith.constant 0 : index
      %c0_23 = arith.constant 0 : index
      %53 = vector.load %arg1[%c0_22, %c0_23] : memref<128x128xf32, #tpu.memory_space<vmem>>, vector<128x128xf32>
      %54 = tpu.transpose %53, [1, 0] : vector<128x128xf32> -> vector<128x128xf32>
      %cst_24 = arith.constant dense<0.000000e+00> : vector<128x128xf32>
      %55 = tpu.matmul %53, %54, %cst_24 {dimension_numbers = #tpu.dot_dimension_numbers<[1], [0], [0], [1], [0, 0, 1, 1], [], []>} : vector<128x128xf32>, vector<128x128xf32>, vector<128x128xf32> -> vector<128x128xf32>
      %56 = arith.mulf %53, %53 : vector<128x128xf32>
      %cst_25 = arith.constant dense<0.000000e+00> : vector<128xf32>
      %57 = vector.multi_reduction <add>, %56, %cst_25 [1] : vector<128x128xf32> to vector<128xf32>
      %58 = vector.shape_cast %57 : vector<128xf32> to vector<128x1xf32>
      %59 = arith.mulf %54, %54 : vector<128x128xf32>
      %cst_26 = arith.constant dense<0.000000e+00> : vector<128xf32>
      %60 = vector.multi_reduction <add>, %59, %cst_26 [0] : vector<128x128xf32> to vector<128xf32>
      %61 = vector.shape_cast %60 : vector<128xf32> to vector<1x128xf32>
      %62 = vector.broadcast %58 : vector<128x1xf32> to vector<128x128xf32>
      %63 = vector.broadcast %61 : vector<1x128xf32> to vector<128x128xf32>
      %64 = arith.addf %62, %63 : vector<128x128xf32>
      %cst_27 = arith.constant 2.000000e+00 : f32
      %65 = vector.broadcast %cst_27 : f32 to vector<128x128xf32>
      %66 = arith.mulf %65, %55 : vector<128x128xf32>
      %67 = arith.subf %64, %66 : vector<128x128xf32>
      %cst_28 = arith.constant 0.000000e+00 : f32
      %68 = vector.broadcast %cst_28 : f32 to vector<128x128xf32>
      %69 = arith.maximumf %67, %68 : vector<128x128xf32>
      %c0_29 = arith.constant 0 : index
      %c0_30 = arith.constant 0 : index
      %70 = vector.load %arg6[%c0_29, %c0_30] : memref<128x128xf32, #tpu.memory_space<vmem>>, vector<128x128xf32>
      tpu.vector_store %arg6[%c0_29, %c0_30], %69 {strides = array<i32>} : memref<128x128xf32, #tpu.memory_space<vmem>>, vector<128x128xf32>,
      %cst_31 = arith.constant 0.000000e+00 : f32
      %71 = vector.broadcast %cst_31 : f32 to vector<96x1xf32>
      %c0_32 = arith.constant 0 : index
      %c0_33 = arith.constant 0 : index
      %72 = vector.load %arg7[%c0_32, %c0_33] : memref<96x1xf32, #tpu.memory_space<vmem>>, vector<96x1xf32>
      tpu.vector_store %arg7[%c0_32, %c0_33], %71 {strides = array<i32>} : memref<96x1xf32, #tpu.memory_space<vmem>>, vector<96x1xf32>,
    } else {
    }
    %3 = tpu.iota {dimensions = array<i32: 1>} : vector<96x128xi32>
    %c0 = arith.constant 0 : index
    %c0_1 = arith.constant 0 : index
    %4 = vector.load %arg2[%c0, %c0_1] : memref<96x1xi32, #tpu.memory_space<vmem>>, vector<96x1xi32>
    %5 = vector.broadcast %4 : vector<96x1xi32> to vector<96x128xi32>
    %6 = arith.cmpi eq, %5, %3 : vector<96x128xi32>
    %7 = arith.extui %6 : vector<96x128xi1> to vector<96x128xi32>
    %8 = arith.sitofp %7 : vector<96x128xi32> to vector<96x128xf32>
    %c0_2 = arith.constant 0 : index
    %c0_3 = arith.constant 0 : index
    %9 = vector.load %arg3[%c0_2, %c0_3] : memref<96x1xi32, #tpu.memory_space<vmem>>, vector<96x1xi32>
    %10 = vector.broadcast %9 : vector<96x1xi32> to vector<96x128xi32>
    %11 = arith.cmpi eq, %10, %3 : vector<96x128xi32>
    %12 = arith.extui %11 : vector<96x128xi1> to vector<96x128xi32>
    %13 = arith.sitofp %12 : vector<96x128xi32> to vector<96x128xf32>
    %c0_4 = arith.constant 0 : index
    %c0_5 = arith.constant 0 : index
    %14 = vector.load %arg4[%c0_4, %c0_5] : memref<96x1xi32, #tpu.memory_space<vmem>>, vector<96x1xi32>
    %15 = vector.broadcast %14 : vector<96x1xi32> to vector<96x128xi32>
    %16 = arith.cmpi eq, %15, %3 : vector<96x128xi32>
    %17 = arith.extui %16 : vector<96x128xi1> to vector<96x128xi32>
    %18 = arith.sitofp %17 : vector<96x128xi32> to vector<96x128xf32>
    %c0_6 = arith.constant 0 : index
    %c0_7 = arith.constant 0 : index
    %19 = vector.load %arg6[%c0_6, %c0_7] : memref<128x128xf32, #tpu.memory_space<vmem>>, vector<128x128xf32>
    %cst = arith.constant dense<0.000000e+00> : vector<96x128xf32>
    %20 = tpu.matmul %8, %19, %cst {dimension_numbers = #tpu.dot_dimension_numbers<[1], [0], [0], [1], [0, 0, 1, 1], [], []>} : vector<96x128xf32>, vector<128x128xf32>, vector<96x128xf32> -> vector<96x128xf32>
    %cst_8 = arith.constant dense<0.000000e+00> : vector<96x128xf32>
    %21 = tpu.matmul %13, %19, %cst_8 {dimension_numbers = #tpu.dot_dimension_numbers<[1], [0], [0], [1], [0, 0, 1, 1], [], []>} : vector<96x128xf32>, vector<128x128xf32>, vector<96x128xf32> -> vector<96x128xf32>
    %22 = arith.mulf %20, %13 : vector<96x128xf32>
    %cst_9 = arith.constant dense<0.000000e+00> : vector<96xf32>
    %23 = vector.multi_reduction <add>, %22, %cst_9 [1] : vector<96x128xf32> to vector<96xf32>
    %24 = vector.shape_cast %23 : vector<96xf32> to vector<96x1xf32>
    %25 = arith.mulf %20, %18 : vector<96x128xf32>
    %cst_10 = arith.constant dense<0.000000e+00> : vector<96xf32>
    %26 = vector.multi_reduction <add>, %25, %cst_10 [1] : vector<96x128xf32> to vector<96xf32>
    %27 = vector.shape_cast %26 : vector<96xf32> to vector<96x1xf32>
    %28 = arith.mulf %21, %18 : vector<96x128xf32>
    %cst_11 = arith.constant dense<0.000000e+00> : vector<96xf32>
    %29 = vector.multi_reduction <add>, %28, %cst_11 [1] : vector<96x128xf32> to vector<96xf32>
    %30 = vector.shape_cast %29 : vector<96xf32> to vector<96x1xf32>
    %31 = math.sqrt %24 : vector<96x1xf32>
    %32 = arith.minimumf %27, %30 : vector<96x1xf32>
    %33 = math.sqrt %32 : vector<96x1xf32>
    %34 = arith.subf %31, %33 : vector<96x1xf32>
    %cst_12 = arith.constant 1.000000e+00 : f32
    %35 = vector.broadcast %cst_12 : f32 to vector<96x1xf32>
    %36 = arith.addf %34, %35 : vector<96x1xf32>
    %cst_13 = arith.constant 0.000000e+00 : f32
    %37 = vector.broadcast %cst_13 : f32 to vector<96x1xf32>
    %38 = arith.maximumf %36, %37 : vector<96x1xf32>
    %c96_i32 = arith.constant 96 : i32
    %39 = arith.muli %arg0, %c96_i32 : i32
    %40 = tpu.iota {dimensions = array<i32: 0>} : vector<96x1xi32>
    %41 = vector.broadcast %39 : i32 to vector<96x1xi32>
    %42 = arith.addi %41, %40 : vector<96x1xi32>
    %c96_i32_14 = arith.constant 96 : i32
    %43 = vector.broadcast %c96_i32_14 : i32 to vector<96x1xi32>
    %44 = arith.cmpi slt, %42, %43 : vector<96x1xi32>
    %cst_15 = arith.constant 0.000000e+00 : f32
    %45 = vector.broadcast %cst_15 : f32 to vector<96x1xf32>
    %46 = arith.select %44, %38, %45 : vector<96x1xi1>, vector<96x1xf32>
    %c0_16 = arith.constant 0 : index
    %c0_17 = arith.constant 0 : index
    %47 = vector.load %arg7[%c0_16, %c0_17] : memref<96x1xf32, #tpu.memory_space<vmem>>, vector<96x1xf32>
    %48 = arith.addf %47, %46 : vector<96x1xf32>
    %c0_18 = arith.constant 0 : index
    %c0_19 = arith.constant 0 : index
    %49 = vector.load %arg7[%c0_18, %c0_19] : memref<96x1xf32, #tpu.memory_space<vmem>>, vector<96x1xf32>
    tpu.vector_store %arg7[%c0_18, %c0_19], %48 {strides = array<i32>} : memref<96x1xf32, #tpu.memory_space<vmem>>, vector<96x1xf32>,
    %c0_i32_20 = arith.constant 0 : i32
    %50 = arith.cmpi eq, %arg0, %c0_i32_20 : i32
    %51 = arith.extui %50 : i1 to i32
    %c0_i32_21 = arith.constant 0 : i32
    %52 = arith.cmpi ne, %51, %c0_i32_21 : i32
    scf.if %52 {
      %c0_22 = arith.constant 0 : index
      %c0_23 = arith.constant 0 : index
      %53 = vector.load %arg7[%c0_22, %c0_23] : memref<96x1xf32, #tpu.memory_space<vmem>>, vector<96x1xf32>
      %54 = vector.shape_cast %53 : vector<96x1xf32> to vector<1x96x1xf32>
      %cst_24 = arith.constant dense<0.000000e+00> : vector<1xf32>
      %55 = vector.multi_reduction <add>, %54, %cst_24 [1, 2] : vector<1x96x1xf32> to vector<1xf32>
      %56 = vector.shape_cast %55 : vector<1xf32> to vector<1x1x1xf32>
      %57 = vector.extract %56[0, 0, 0] : f32 from vector<1x1x1xf32>
      %cst_25 = arith.constant 9.600000e+01 : f32
      %58 = arith.divf %57, %cst_25 : f32
      %c0_26 = arith.constant 0 : index
      %c0_27 = arith.constant 0 : index
      %59 = memref.load %arg5[%c0_26, %c0_27] : memref<1x1xf32, #tpu.memory_space<smem>>
      memref.store %58, %arg5[%c0_26, %c0_27] : memref<1x1xf32, #tpu.memory_space<smem>>
    } else {
    }
    return
  }
  func.func @transform_0(%arg0: i32) -> (i32, i32) {
    %c0_i32 = arith.constant 0 : i32
    %c0_i32_0 = arith.constant 0 : i32
    %c0_i32_1 = arith.constant 0 : i32
    return %c0_i32, %c0_i32_0 : i32, i32
  }
  func.func @transform_1(%arg0: i32) -> (i32, i32) {
    %c0_i32 = arith.constant 0 : i32
    %c0_i32_0 = arith.constant 0 : i32
    return %arg0, %c0_i32 : i32, i32
  }
  func.func @transform_2(%arg0: i32) -> (i32, i32) {
    %c0_i32 = arith.constant 0 : i32
    %c0_i32_0 = arith.constant 0 : i32
    return %arg0, %c0_i32 : i32, i32
  }
  func.func @transform_3(%arg0: i32) -> (i32, i32) {
    %c0_i32 = arith.constant 0 : i32
    %c0_i32_0 = arith.constant 0 : i32
    return %arg0, %c0_i32 : i32, i32
  }
  func.func @transform_4(%arg0: i32) -> (i32, i32) {
    %c0_i32 = arith.constant 0 : i32
    %c0_i32_0 = arith.constant 0 : i32
    %c0_i32_1 = arith.constant 0 : i32
    return %c0_i32, %c0_i32_0 : i32, i32
  }
}

</mosaic_0001>

<bundles_post_ra>
// kernel: tpu_custom_call.1
= control target key start
LH: loop header
LB: loop body
LE: loop exit
PB: predicated region body
PF: predicated region fallthrough
CT: control target
= control target key end

     0   :  { %s2780_s0 = inlined_call_operand.vmem [shape: f32[128,128], index: 0, kind: input, shape index: {}]   ;;  %s2781_s1 = inlined_call_operand.vmem [shape: s32[96,1], index: 1, kind: input, shape index: {}]   ;;  %s2782_s2 = inlined_call_operand.vmem [shape: s32[96,1], index: 2, kind: input, shape index: {}]   ;;  %s2783_s3 = inlined_call_operand.vmem [shape: s32[96,1], index: 3, kind: input, shape index: {}]   ;;  %s2784_s4 = inlined_call_operand.hbm [shape: f32[1,1], index: 4, kind: output, shape index: {}]  }
   0x1   :  { %v22_v0 = vld [vmem:[%s2780_s0] sm:$0xff]  ;;  %v1909_v1 = vld [vmem:[%s2780_s0 + $0x8] sm:$0xff]  ;;  %v1916_v4 = vld [vmem:[%s2780_s0 + $0x10] sm:$0xff] }
   0x2   :  { %38 = vxpose.xlu0.b32.start [1/16] %v22_v0, 128  ;;  %v215_v2 = vmul.f32 %v22_v0, %v22_v0  ;;  %1570 = vmatprep.mubr.f32.mxu0 %v22_v0  ;;  %v216_v3 = vmul.f32 %v1909_v1, %v1909_v1 }
   0x4   :  { %231 = vadd.xlane.f32.xlu1 %v215_v2 }
   0x6   :  { %39 = vxpose.xlu0.b32.cont [2/16] %v1909_v1, 128 }
   0x7   :  { %9 = vsyncpa [#allocation5], 0  ;;  %v217_v5 = vmul.f32 %v1916_v4, %v1916_v4  ;;  %v1924_v6 = vld [vmem:[%s2780_s0 + $0x18] sm:$0xff]  ;;  %v1932_v8 = vld [vmem:[%s2780_s0 + $0x20] sm:$0xff]  ;;  %v1874_v32 = vmov 0   ;;  %s1862_s12 = scalar_lea.hbm %s2784_s4, 16 }
   0x8   :  { %233 = vadd.xlane.f32.xlu1 %v216_v3  ;;  %v218_v7 = vmul.f32 %v1924_v6, %v1924_v6  ;;  %v219_v9 = vmul.f32 %v1932_v8, %v1932_v8  ;;  %v1940_v10 = vld [vmem:[%s2780_s0 + $0x28] sm:$0xff]  ;;  %v1948_v12 = vld [vmem:[%s2780_s0 + $0x30] sm:$0xff]  ;;  %v1956_v14 = vld [vmem:[%s2780_s0 + $0x38] sm:$0xff]  ;;  %p1863_p0 = scmp.ne.s32.totalorder %s2784_s4, %s1862_s12  ;;  %p1866_p1 = scmp.lt.u32.totalorder %s1862_s12, %s2784_s4 }
   0x9   :  { %v220_v11 = vmul.f32 %v1940_v10, %v1940_v10  ;;  %v221_v13 = vmul.f32 %v1948_v12, %v1948_v12  ;;  %v222_v15 = vmul.f32 %v1956_v14, %v1956_v14  ;;  %v1964_v16 = vld [vmem:[%s2780_s0 + $0x40] sm:$0xff]  ;;  %v1972_v18 = vld [vmem:[%s2780_s0 + $0x48] sm:$0xff]  ;;  %v1980_v20 = vld [vmem:[%s2780_s0 + $0x50] sm:$0xff]  ;;  %1813 = vset.pattern.permute.xlu1 %v1874_v32 }
   0xa   :  { %40 = vxpose.xlu0.b32.cont [3/16] %v1916_v4, 128  ;;  %v223_v17 = vmul.f32 %v1964_v16, %v1964_v16  ;;  %v224_v19 = vmul.f32 %v1972_v18, %v1972_v18  ;;  %v225_v21 = vmul.f32 %v1980_v20, %v1980_v20  ;;  %v1988_v22 = vld [vmem:[%s2780_s0 + $0x58] sm:$0xff]  ;;  %v1996_v24 = vld [vmem:[%s2780_s0 + $0x60] sm:$0xff]  ;;  %v2004_v26 = vld [vmem:[%s2780_s0 + $0x68] sm:$0xff]  ;;  %p1868_p2 = pnand %p1866_p1, %p1863_p0 }
   0xb   :  { %v226_v23 = vmul.f32 %v1988_v22, %v1988_v22  ;;  %v227_v25 = vmul.f32 %v1996_v24, %v1996_v24  ;;  %v228_v27 = vmul.f32 %v2004_v26, %v2004_v26  ;;  %v2012_v28 = vld [vmem:[%s2780_s0 + $0x70] sm:$0xff]  ;;  %v2020_v30 = vld [vmem:[%s2780_s0 + $0x78] sm:$0xff]  ;;  %v396_v33 = vld [vmem:[%s2781_s1 + $0x8] sm:$0xff] }
   0xc   :  { %235 = vadd.xlane.f32.xlu1 %v217_v5  ;;  %v229_v29 = vmul.f32 %v2012_v28, %v2012_v28  ;;  %v230_v31 = vmul.f32 %v2020_v30, %v2020_v30  ;;  %v397_v34 = vld [vmem:[%s2781_s1 + $0x10] sm:$0xff]  ;;  %v398_v35 = vld [vmem:[%s2781_s1 + $0x18] sm:$0xff]  ;;  %v399_v36 = vld [vmem:[%s2781_s1 + $0x20] sm:$0xff] }
   0xd   :  { %v400_v37 = vld [vmem:[%s2781_s1 + $0x28] sm:$0xff]  ;;  %v395_v38 = vld [vmem:[%s2781_s1] sm:$0xff]  ;;  %v401_v39 = vld [vmem:[%s2781_s1 + $0x30] sm:$0xff] }
   0xe   :  { %41 = vxpose.xlu0.b32.cont [4/16] %v1924_v6, 128  ;;  %v402_v40 = vld [vmem:[%s2781_s1 + $0x38] sm:$0xff]  ;;  %v479_v41 = vld [vmem:[%s2782_s2] sm:$0xff]  ;;  %v480_v43 = vld [vmem:[%s2782_s2 + $0x8] sm:$0xff] }
   0xf   :  { %v403_v42 = vld [vmem:[%s2781_s1 + $0x40] sm:$0xff]  ;;  %v404_v44 = vld [vmem:[%s2781_s1 + $0x48] sm:$0xff]  ;;  %v481_v45 = vld [vmem:[%s2782_s2 + $0x10] sm:$0xff] }
  0x10   :  { %237 = vadd.xlane.f32.xlu1 %v218_v7  ;;  %v405_v46 = vld [vmem:[%s2781_s1 + $0x50] sm:$0xff]  ;;  %v482_v47 = vld [vmem:[%s2782_s2 + $0x18] sm:$0xff]  ;;  %v483_v49 = vld [vmem:[%s2782_s2 + $0x20] sm:$0xff] }
  0x11   :  { %v406_v48 = vld [vmem:[%s2781_s1 + $0x58] sm:$0xff]  ;;  %v485_v50 = vld [vmem:[%s2782_s2 + $0x30] sm:$0xff]  ;;  %v484_v51 = vld [vmem:[%s2782_s2 + $0x28] sm:$0xff] }
  0x12   :  { %42 = vxpose.xlu0.b32.cont [5/16] %v1932_v8, 128  ;;  %v487_v52 = vld [vmem:[%s2782_s2 + $0x40] sm:$0xff]  ;;  %v486_v54 = vld [vmem:[%s2782_s2 + $0x38] sm:$0xff]  ;;  %v489_v55 = vld [vmem:[%s2782_s2 + $0x50] sm:$0xff] }
  0x13   :  { %v488_v59 = vld [vmem:[%s2782_s2 + $0x48] sm:$0xff]  ;;  %v563_v61 = vld [vmem:[%s2783_s3] sm:$0xff]  ;;  %v490_v2 = vld [vmem:[%s2782_s2 + $0x58] sm:$0xff] }
  0x14   :  { %239 = vadd.xlane.f32.xlu1 %v219_v9  ;;  %v565_v5 = vld [vmem:[%s2783_s3 + $0x10] sm:$0xff] }
  0x16   :  { %43 = vxpose.xlu0.b32.cont [6/16] %v1940_v10, 128 }
  0x18   :  { %241 = vadd.xlane.f32.xlu1 %v220_v11 }
  0x1a   :  { %44 = vxpose.xlu0.b32.cont [7/16] %v1948_v12, 128 }
  0x1c   :  { %243 = vadd.xlane.f32.xlu1 %v221_v13  ;;  %v564_v13 = vld [vmem:[%s2783_s3 + $0x8] sm:$0xff] }
  0x1e   :  { %45 = vxpose.xlu0.b32.cont [8/16] %v1956_v14, 128 }
  0x20   :  { %245 = vadd.xlane.f32.xlu1 %v222_v15 }
  0x22   :  { %46 = vxpose.xlu0.b32.cont [9/16] %v1964_v16, 128 }
  0x24   :  { %247 = vadd.xlane.f32.xlu1 %v223_v17 }
  0x26   :  { %47 = vxpose.xlu0.b32.cont [10/16] %v1972_v18, 128 }
  0x28   :  { %249 = vadd.xlane.f32.xlu1 %v224_v19  ;;  %v567_v19 = vld [vmem:[%s2783_s3 + $0x20] sm:$0xff] }
  0x2a   :  { %48 = vxpose.xlu0.b32.cont [11/16] %v1980_v20, 128 }
  0x2c   :  { %251 = vadd.xlane.f32.xlu1 %v225_v21 }
  0x2e   :  { %49 = vxpose.xlu0.b32.cont [12/16] %v1988_v22, 128 }
  0x30   :  { %253 = vadd.xlane.f32.xlu1 %v226_v23 }
  0x32   :  { %50 = vxpose.xlu0.b32.cont [13/16] %v1996_v24, 128 }
  0x34   :  { %255 = vadd.xlane.f32.xlu1 %v227_v25  ;;  %v566_v25 = vld [vmem:[%s2783_s3 + $0x18] sm:$0xff] }
  0x36   :  { %51 = vxpose.xlu0.b32.cont [14/16] %v2004_v26, 128 }
  0x38   :  { %257 = vadd.xlane.f32.xlu1 %v228_v27 }
  0x3a   :  { %52 = vxpose.xlu0.b32.cont [15/16] %v2012_v28, 128 }
  0x3c   :  { %259 = vadd.xlane.f32.xlu1 %v229_v29 }
  0x3e   :  { %53 = vxpose.xlu0.b32.end [16/16] %v2020_v30, 128 }
  0x40   :  { %261 = vadd.xlane.f32.xlu1 %v230_v31  ;;  %v569_v31 = vld [vmem:[%s2783_s3 + $0x30] sm:$0xff] }
  0x51   :  { %411 = vperm.xlu1 %1813, %v396_v33  }
  0x55   :  { %414 = vperm.xlu1 %1813, %v397_v34  }
  0x59   :  { %417 = vperm.xlu1 %1813, %v398_v35   ;;  %v568_v35 = vld [vmem:[%s2783_s3 + $0x28] sm:$0xff] }
  0x5d   :  { %420 = vperm.xlu1 %1813, %v399_v36  }
  0x61   :  { %423 = vperm.xlu1 %1813, %v400_v37  }
  0x65   :  { %426 = vperm.xlu1 %1813, %v401_v39  }
  0x67   :  { %1812 = vset.pattern.permute.xlu0 %v1874_v32 }
  0x68   :  { %408 = vperm.xlu0 %1812, %v395_v38   ;;  %v571_v38 = vld [vmem:[%s2783_s3 + $0x40] sm:$0xff] }
  0x69   :  { %492 = vperm.xlu1 %1813, %v479_v41   ;;  %v570_v41 = vld [vmem:[%s2783_s3 + $0x38] sm:$0xff] }
  0x6c   :  { %429 = vperm.xlu0 %1812, %v402_v40  }
  0x6d   :  { %495 = vperm.xlu1 %1813, %v480_v43  }
  0x70   :  { %432 = vperm.xlu0 %1812, %v403_v42  }
  0x71   :  { %498 = vperm.xlu1 %1813, %v481_v45  }
  0x74   :  { %435 = vperm.xlu0 %1812, %v404_v44   ;;  %v573_v44 = vld [vmem:[%s2783_s3 + $0x50] sm:$0xff] }
  0x75   :  { %501 = vperm.xlu1 %1813, %v482_v47  }
  0x78   :  { %438 = vperm.xlu0 %1812, %v405_v46  }
  0x79   :  { %504 = vperm.xlu1 %1813, %v483_v49  }
  0x7c   :  { %441 = vperm.xlu0 %1812, %v406_v48   ;;  %v572_v48 = vld [vmem:[%s2783_s3 + $0x48] sm:$0xff] }
  0x7d   :  { %507 = vperm.xlu1 %1813, %v484_v51  }
  0x80   :  { %510 = vperm.xlu0 %1812, %v485_v50  }
  0x81   :  { %513 = vperm.xlu1 %1813, %v486_v54  }
  0x82   :  { %v54_v53 = vpop.trf.xlu0 }
  0x83   :  { %v263_v60 = vmul.f32 %v54_v53, %v54_v53 }
  0x84   :  { %516 = vperm.xlu0 %1812, %v487_v52  }
  0x85   :  { %519 = vperm.xlu1 %1813, %v488_v59  }
  0x86   :  { %v55_v56 = vpop.trf.xlu0 }
  0x87   :  { %v264_v57 = vmul.f32 %v55_v56, %v55_v56  ;;  %v1694_v58 = vpack.c.bf16 %v55_v56, %v54_v53  ;;  %v574_v53 = vld [vmem:[%s2783_s3 + $0x58] sm:$0xff] }
  0x88   :  { %522 = vperm.xlu0 %1812, %v489_v55  }
  0x89   :  { %1695 = vmatprep.subr.bf16.mxu0 %v1694_v58  ;;  %v279_v63 = vadd.f32 %v264_v57, %v263_v60  ;;  %525 = vperm.xlu1 %1813, %v490_v2  }
  0x8a   :  { %1697 = vmatpush3.bf16.msra.mxu0 %v1694_v58  ;;  %v56_v62 = vpop.trf.xlu0 }
  0x8b   :  { %v265_v0 = vmul.f32 %v56_v62, %v56_v62 }
  0x8c   :  { %576 = vperm.xlu0 %1812, %v563_v61  }
  0x8d   :  { %v280_v3 = vadd.f32 %v279_v63, %v265_v0  ;;  %579 = vperm.xlu1 %1813, %v564_v13  }
  0x8e   :  { %v57_v7 = vpop.trf.xlu0 }
  0x8f   :  { %v1698_v9 = vpack.c.bf16 %v57_v7, %v56_v62  ;;  %v266_v11 = vmul.f32 %v57_v7, %v57_v7 }
  0x90   :  { %582 = vperm.xlu0 %1812, %v565_v5  }
  0x91   :  { %v281_v15 = vadd.f32 %v280_v3, %v266_v11  ;;  %1699 = vmatprep.subr.bf16.mxu0 %v1698_v9  ;;  %v2107_v17 = vpop.xlane.xlu1 %231  ;;  %585 = vperm.xlu1 %1813, %v566_v25  }
  0x92   :  { %1701 = vmatpush3.bf16.msra.mxu0 %v1698_v9  ;;  %v58_v21 = vpop.trf.xlu0 }
  0x93   :  { %v267_v23 = vmul.f32 %v58_v21, %v58_v21 }
  0x94   :  { %588 = vperm.xlu0 %1812, %v567_v19  }
  0x95   :  { %v282_v27 = vadd.f32 %v281_v15, %v267_v23  ;;  %v2115_v29 = vpop.xlane.xlu1 %233  ;;  %591 = vperm.xlu1 %1813, %v568_v35  }
  0x96   :  { %v59_v32 = vpop.trf.xlu0 }
  0x97   :  { %v1702_v33 = vpack.c.bf16 %v59_v32, %v58_v21  ;;  %v268_v34 = vmul.f32 %v59_v32, %v59_v32 }
  0x98   :  { %594 = vperm.xlu0 %1812, %v569_v31  }
  0x99   :  { %v283_v36 = vadd.f32 %v282_v27, %v268_v34  ;;  %1703 = vmatprep.subr.bf16.mxu0 %v1702_v33  ;;  %v2123_v37 = vpop.xlane.xlu1 %235  ;;  %597 = vperm.xlu1 %1813, %v570_v41  }
  0x9a   :  { %1705 = vmatpush3.bf16.msra.mxu0 %v1702_v33  ;;  %v60_v39 = vpop.trf.xlu0 }
  0x9b   :  { %v269_v40 = vmul.f32 %v60_v39, %v60_v39 }
  0x9c   :  { %600 = vperm.xlu0 %1812, %v571_v38  }
  0x9d   :  { %v284_v42 = vadd.f32 %v283_v36, %v269_v40  ;;  %v2131_v43 = vpop.xlane.xlu1 %237  ;;  %603 = vperm.xlu1 %1813, %v572_v48  }
  0x9e   :  { %v61_v45 = vpop.trf.xlu0 }
  0x9f   :  { %v1706_v46 = vpack.c.bf16 %v61_v45, %v60_v39  ;;  %v270_v47 = vmul.f32 %v61_v45, %v61_v45 }
  0xa0   :  { %606 = vperm.xlu0 %1812, %v573_v44  }
  0xa1   :  { %v285_v49 = vadd.f32 %v284_v42, %v270_v47  ;;  %1707 = vmatprep.subr.bf16.mxu0 %v1706_v46  ;;  %v2139_v50 = vpop.xlane.xlu1 %239  ;;  %609 = vperm.xlu1 %1813, %v574_v53  }
  0xa2   :  { %1709 = vmatpush3.bf16.msra.mxu0 %v1706_v46  ;;  %v62_v51 = vpop.trf.xlu0 }
  0xa3   :  { %v271_v52 = vmul.f32 %v62_v51, %v62_v51 }
  0xa5   :  { %v286_v54 = vadd.f32 %v285_v49, %v271_v52  ;;  %v2144_v55 = vpop.xlane.xlu1 %241 }
  0xa6   :  { %v63_v56 = vpop.trf.xlu0 }
  0xa7   :  { %v1710_v57 = vpack.c.bf16 %v63_v56, %v62_v51  ;;  %v272_v58 = vmul.f32 %v63_v56, %v63_v56 }
  0xa9   :  { %v287_v59 = vadd.f32 %v286_v54, %v272_v58  ;;  %1711 = vmatprep.subr.bf16.mxu0 %v1710_v57  ;;  %v244_v60 = vpop.xlane.xlu1 %243 }
  0xaa   :  { %1713 = vmatpush3.bf16.msra.mxu0 %v1710_v57  ;;  %v64_v61 = vpop.trf.xlu0 }
  0xab   :  { %v273_v62 = vmul.f32 %v64_v61, %v64_v61 }
  0xad   :  { %v288_v63 = vadd.f32 %v287_v59, %v273_v62  ;;  %v246_v0 = vpop.xlane.xlu1 %245 }
  0xae   :  { %v65_v2 = vpop.trf.xlu0 }
  0xaf   :  { %v1714_v3 = vpack.c.bf16 %v65_v2, %v64_v61  ;;  %v274_v5 = vmul.f32 %v65_v2, %v65_v2 }
  0xb1   :  { %v289_v7 = vadd.f32 %v288_v63, %v274_v5  ;;  %1715 = vmatprep.subr.bf16.mxu0 %v1714_v3  ;;  %v248_v9 = vpop.xlane.xlu1 %247 }
  0xb2   :  { %1717 = vmatpush3.bf16.msra.mxu0 %v1714_v3  ;;  %v66_v11 = vpop.trf.xlu0 }
  0xb3   :  { %v275_v13 = vmul.f32 %v66_v11, %v66_v11 }
  0xb5   :  { %v290_v15 = vadd.f32 %v289_v7, %v275_v13  ;;  %v250_v19 = vpop.xlane.xlu1 %249 }
  0xb6   :  { %v67_v21 = vpop.trf.xlu0 }
  0xb7   :  { %v1718_v23 = vpack.c.bf16 %v67_v21, %v66_v11  ;;  %v276_v25 = vmul.f32 %v67_v21, %v67_v21 }
  0xb9   :  { %v291_v27 = vadd.f32 %v290_v15, %v276_v25  ;;  %1719 = vmatprep.subr.bf16.mxu0 %v1718_v23  ;;  %v252_v31 = vpop.xlane.xlu1 %251 }
  0xba   :  { %1721 = vmatpush3.bf16.msra.mxu0 %v1718_v23  ;;  %v68_v32 = vpop.trf.xlu0 }
  0xbb   :  { %v277_v33 = vmul.f32 %v68_v32, %v68_v32 }
  0xbd   :  { %v292_v34 = vadd.f32 %v291_v27, %v277_v33  ;;  %v254_v35 = vpop.xlane.xlu1 %253 }
  0xbe   :  { %v69_v36 = vpop.trf.xlu0 }
  0xbf   :  { %v1722_v38 = vpack.c.bf16 %v69_v36, %v68_v32  ;;  %v278_v39 = vmul.f32 %v69_v36, %v69_v36 }
  0xc1   :  { %v293_v40 = vadd.f32 %v292_v34, %v278_v39  ;;  %1723 = vmatprep.subr.bf16.mxu0 %v1722_v38  ;;  %v256_v41 = vpop.xlane.xlu1 %255 }
  0xc2   :  { %1725 = vmatpush3.bf16.msra.mxu0 %v1722_v38 }
  0xc3   :  { %v294_v42 = vrot.slane %v293_v40, 4 }
  0xc5   :  { %v295_v44 = vadd.f32 %v294_v42, %v293_v40  ;;  %1571 = vmatmul.mubr.f32.vlgmr.msra.gmra.mrb[0].mxu0 %v1909_v1  ;;  %v258_v45 = vpop.xlane.xlu1 %257 }
  0xc6   :  { %1573 = vmatprep.mubr.f32.mxu0 %v1916_v4 }
  0xc7   :  { %v296_v46 = vrot.slane %v295_v44, 2 }
  0xc9   :  { %v297_v47 = vadd.f32 %v296_v46, %v295_v44  ;;  %1574 = vmatmul.mubr.f32.gmra.mrb[2].mxu0 %v1924_v6  ;;  %v260_v48 = vpop.xlane.xlu1 %259 }
  0xca   :  { %1576 = vmatprep.mubr.f32.mxu0 %v1932_v8 }
  0xcb   :  { %v298_v49 = vrot.slane %v297_v47, 1 }
  0xcd   :  { %v2150_v51 = vadd.f32 %v298_v49, %v297_v47  ;;  %1577 = vmatmul.mubr.f32.gmra.mrb[4].mxu0 %v1940_v10  ;;  %v262_v52 = vpop.xlane.xlu1 %261 }
  0xce   :  { %1579 = vmatprep.mubr.f32.mxu0 %v1948_v12 }
  0xcf   :  { %v2155_v1 = vadd.f32 %v2150_v51, %v254_v35  ;;  %v2158_v4 = vadd.f32 %v2150_v51, %v256_v41  ;;  %v2161_v53 = vadd.f32 %v2150_v51, %v258_v45  ;;  %v2164_v6 = vadd.f32 %v2150_v51, %v260_v48 }
  0xd0   :  { %v2167_v8 = vadd.f32 %v2150_v51, %v262_v52  ;;  %v2171_v10 = vadd.f32 %v2150_v51, %v246_v0  ;;  %v2175_v12 = vadd.f32 %v2150_v51, %v244_v60  ;;  %v2178_v54 = vadd.f32 %v2150_v51, %v250_v19 }
  0xd1   :  { %1580 = vmatmul.mubr.f32.gmra.mrb[6].mxu0 %v1956_v14  ;;  %v2181_v56 = vadd.f32 %v2150_v51, %v248_v9  ;;  %v2184_v57 = vadd.f32 %v2150_v51, %v252_v31  ;;  %v2193_v14 = vpop.permute.xlu1 %411  ;;  %v301_v61 = vadd.f32 %v2150_v51, %v2115_v29  ;;  %v300_v0 = vadd.f32 %v2150_v51, %v2107_v17 }
  0xd2   :  { %1582 = vmatprep.mubr.f32.mxu0 %v1964_v16  ;;  %v303_v11 = vadd.f32 %v2150_v51, %v2131_v43  ;;  %v302_v21 = vadd.f32 %v2150_v51, %v2123_v37  ;;  %v305_v32 = vadd.f32 %v2150_v51, %v2144_v55  ;;  %v304_v43 = vadd.f32 %v2150_v51, %v2139_v50 }
  0xd5   :  { %1583 = vmatmul.mubr.f32.gmra.mrb[8].mxu0 %v1972_v18  ;;  %v2195_v16 = vpop.permute.xlu1 %414 }
  0xd6   :  { %1585 = vmatprep.mubr.f32.mxu0 %v1980_v20  ;;  %v393_v20 = vlaneseq }
  0xd9   :  { %1586 = vmatmul.mubr.f32.gmra.mrb[10].mxu0 %v1988_v22  ;;  %v2197_v58 = vpop.permute.xlu1 %417 }
  0xda   :  { %1588 = vmatprep.mubr.f32.mxu0 %v1996_v24  ;;  %v2205_v24 = vand.u32 127, %v393_v20 }
  0xdc   :  { %vm444_vm2 = vcmp.eq.s32.totalorder %v2193_v14, %v2205_v24  ;;  %vm445_vm4 = vcmp.eq.s32.totalorder %v2195_v16, %v2205_v24  ;;  %vm446_vm6 = vcmp.eq.s32.totalorder %v2197_v58, %v2205_v24 }
  0xdd   :  { %1589 = vmatmul.mubr.f32.gmra.mrb[12].mxu0 %v2004_v26  ;;  %v2199_v59 = vpop.permute.xlu1 %420 }
  0xde   :  { %1591 = vmatprep.mubr.f32.mxu0 %v2012_v28  ;;  %v1875_v28 = vmov 1.0   ;;  %vm447_vm8 = vcmp.eq.s32.totalorder %v2199_v59, %v2205_v24 }
  0xe1   :  { %1592 = vmatmul.mubr.f32.gmra.mrb[14].mxu0 %v2020_v30  ;;  %v2201_v18 = vpop.permute.xlu1 %423 }
  0xe2   :  { %vm448_vm10 = vcmp.eq.s32.totalorder %v2201_v18, %v2205_v24 }
  0xe5   :  { %v2203_v22 = vpop.permute.xlu1 %426 }
  0xe6   :  { %vm449_vm12 = vcmp.eq.s32.totalorder %v2203_v22, %v2205_v24 }
  0xe7   :  { %v409_v30 = vpop.permute.xlu0 %408 }
  0xe8   :  { %vm443_vm1 = vcmp.eq.s32.totalorder %v409_v30, %v2205_v24 }
  0xe9   :  { %v2207_v26 = vpop.permute.xlu1 %492  ;;  %1626 = vmatprep.mubr.msk.f32.mxu1 %vm443_vm1, %v1875_v28 }
  0xea   :  { %vm527_vm0 = vcmp.eq.s32.totalorder %v2207_v26, %v2205_v24 }
  0xeb   :  { %1676 = vmatprep.mubr.msk.f32.mxu0 %vm527_vm0, %v1875_v28 }
 0x198   :  { %v1572_v60 = vpop.f32.mrb[0].mxu0 }
 0x199   :  { %v317_v62 = vmul.f32 2.0, %v1572_v60  ;;  %v136_v63 = vpop.f32.mrb[1].mxu0 }
 0x19a   :  { %v316_v2 = vmul.f32 2.0, %v136_v63 }
 0x19b   :  { %v333_v3 = vsub.f32 %v301_v61, %v317_v62 }
 0x19c   :  { %v332_v5 = vsub.f32 %v300_v0, %v316_v2  ;;  %v1575_v7 = vpop.f32.mrb[2].mxu0 }
 0x19d   :  { %v349_v9 = vmax.f32 %v333_v3, 0.0  ;;  %v319_v13 = vmul.f32 2.0, %v1575_v7  ;;  %v146_v15 = vpop.f32.mrb[3].mxu0 }
 0x19e   :  { %v348_v19 = vmax.f32 %v332_v5, 0.0  ;;  %v318_v29 = vmul.f32 2.0, %v146_v15  ;;  %v2258_v5 = vpop.permute.xlu1 %495 }
 0x19f   :  { %v335_v23 = vsub.f32 %v303_v11, %v319_v13  ;;  %vm528_vm3 = vcmp.eq.s32.totalorder %v2258_v5, %v2205_v24 }
 0x1a0   :  { %v2225_v25 = vpack.c.bf16 %v349_v9, %v348_v19  ;;  %v334_v27 = vsub.f32 %v302_v21, %v318_v29  ;;  %v1578_v17 = vpop.f32.mrb[4].mxu0 }
 0x1a1   :  { %v351_v31 = vmax.f32 %v335_v23, 0.0  ;;  %v321_v33 = vmul.f32 2.0, %v1578_v17  ;;  %v156_v34 = vpop.f32.mrb[5].mxu0 }
 0x1a2   :  { %v350_v35 = vmax.f32 %v334_v27, 0.0  ;;  %v320_v36 = vmul.f32 2.0, %v156_v34  ;;  %1727 = vmatprep.subr.bf16.mxu1 %v2225_v25  ;;  %1759 = vmatprep.subr.bf16.mxu0 %v2225_v25 }
 0x1a3   :  { %v337_v37 = vsub.f32 %v305_v32, %v321_v33  ;;  %1729 = vmatpush3.bf16.msra.mxu1 %v2225_v25  ;;  %1761 = vmatpush3.bf16.msra.mxu0 %v2225_v25  ;;  %v2271_v32 = vpop.permute.xlu1 %498 }
 0x1a4   :  { %v2235_v38 = vpack.c.bf16 %v351_v31, %v350_v35  ;;  %v336_v39 = vsub.f32 %v304_v43, %v320_v36  ;;  %v1581_v55 = vpop.f32.mrb[6].mxu0  ;;  %vm529_vm5 = vcmp.eq.s32.totalorder %v2271_v32, %v2205_v24 }
 0x1a5   :  { %v353_v40 = vmax.f32 %v337_v37, 0.0  ;;  %v323_v41 = vmul.f32 2.0, %v1581_v55  ;;  %v166_v42 = vpop.f32.mrb[7].mxu0 }
 0x1a6   :  { %v352_v44 = vmax.f32 %v336_v39, 0.0  ;;  %v322_v45 = vmul.f32 2.0, %v166_v42  ;;  %1731 = vmatprep.subr.bf16.mxu1 %v2235_v38  ;;  %1763 = vmatprep.subr.bf16.mxu0 %v2235_v38 }
 0x1a7   :  { %v339_v50 = vsub.f32 %v2171_v10, %v323_v41  ;;  %1733 = vmatpush3.bf16.msra.mxu1 %v2235_v38  ;;  %1765 = vmatpush3.bf16.msra.mxu0 %v2235_v38  ;;  %v2285_v39 = vpop.permute.xlu1 %501 }
 0x1a8   :  { %v2242_v46 = vpack.c.bf16 %v353_v40, %v352_v44  ;;  %v338_v47 = vsub.f32 %v2175_v12, %v322_v45  ;;  %v1584_v48 = vpop.f32.mrb[8].mxu0  ;;  %vm530_vm7 = vcmp.eq.s32.totalorder %v2285_v39, %v2205_v24 }
 0x1a9   :  { %v355_v49 = vmax.f32 %v339_v50, 0.0  ;;  %v325_v51 = vmul.f32 2.0, %v1584_v48  ;;  %v176_v52 = vpop.f32.mrb[9].mxu0  ;;  %v1876_v50 = vmov 0.0  }
 0x1aa   :  { %v354_v20 = vmax.f32 %v338_v47, 0.0  ;;  %v324_v30 = vmul.f32 2.0, %v176_v52  ;;  %1735 = vmatprep.subr.bf16.mxu1 %v2242_v46  ;;  %1767 = vmatprep.subr.bf16.mxu0 %v2242_v46  ;;  %v1402_v48 = vsel %vm527_vm0, 1.0, %v1876_v50 }
 0x1ab   :  { %v341_v10 = vsub.f32 %v2178_v54, %v325_v51  ;;  %1737 = vmatpush3.bf16.msra.mxu1 %v2242_v46  ;;  %1769 = vmatpush3.bf16.msra.mxu0 %v2242_v46 }
 0x1ac   :  { %v2250_v60 = vpack.c.bf16 %v355_v49, %v354_v20  ;;  %v340_v12 = vsub.f32 %v2181_v56, %v324_v30  ;;  %v1587_v61 = vpop.f32.mrb[10].mxu0 }
 0x1ad   :  { %v357_v62 = vmax.f32 %v341_v10, 0.0  ;;  %v327_v63 = vmul.f32 2.0, %v1587_v61  ;;  %v186_v0 = vpop.f32.mrb[11].mxu0  ;;  %v1403_v10 = vsel %vm528_vm3, 1.0, %v1876_v50 }
 0x1ae   :  { %v356_v2 = vmax.f32 %v340_v12, 0.0  ;;  %v326_v3 = vmul.f32 2.0, %v186_v0  ;;  %1739 = vmatprep.subr.bf16.mxu1 %v2250_v60  ;;  %1771 = vmatprep.subr.bf16.mxu0 %v2250_v60 }
 0x1af   :  { %v343_v54 = vsub.f32 %v2155_v1, %v327_v63  ;;  %1741 = vmatpush3.bf16.msra.mxu1 %v2250_v60  ;;  %1773 = vmatpush3.bf16.msra.mxu0 %v2250_v60 }
 0x1b0   :  { %v2260_v7 = vpack.c.bf16 %v357_v62, %v356_v2  ;;  %v342_v56 = vsub.f32 %v2184_v57, %v326_v3  ;;  %v1590_v9 = vpop.f32.mrb[12].mxu0 }
 0x1b1   :  { %v359_v11 = vmax.f32 %v343_v54, 0.0  ;;  %v329_v13 = vmul.f32 2.0, %v1590_v9  ;;  %v196_v15 = vpop.f32.mrb[13].mxu0 }
 0x1b2   :  { %v358_v19 = vmax.f32 %v342_v56, 0.0  ;;  %v328_v21 = vmul.f32 2.0, %v196_v15  ;;  %1743 = vmatprep.subr.bf16.mxu1 %v2260_v7  ;;  %1775 = vmatprep.subr.bf16.mxu0 %v2260_v7 }
 0x1b3   :  { %v345_v1 = vsub.f32 %v2161_v53, %v329_v13  ;;  %1745 = vmatpush3.bf16.msra.mxu1 %v2260_v7  ;;  %1777 = vmatpush3.bf16.msra.mxu0 %v2260_v7  ;;  %v430_v53 = vpop.permute.xlu0 %429 }
 0x1b4   :  { %v2268_v29 = vpack.c.bf16 %v359_v11, %v358_v19  ;;  %v344_v57 = vsub.f32 %v2158_v4, %v328_v21  ;;  %v1593_v23 = vpop.f32.mrb[14].mxu0  ;;  %vm450_vm13 = vcmp.eq.s32.totalorder %v430_v53, %v2205_v24 }
 0x1b5   :  { %v361_v27 = vmax.f32 %v345_v1, 0.0  ;;  %v331_v17 = vmul.f32 2.0, %v1593_v23  ;;  %v206_v31 = vpop.f32.mrb[15].mxu0  ;;  %v1404_v1 = vsel %vm529_vm5, 1.0, %v1876_v50 }
 0x1b6   :  { %v360_v33 = vmax.f32 %v344_v57, 0.0  ;;  %v330_v34 = vmul.f32 2.0, %v206_v31  ;;  %1747 = vmatprep.subr.bf16.mxu1 %v2268_v29  ;;  %1779 = vmatprep.subr.bf16.mxu0 %v2268_v29  ;;  %v1405_v31 = vsel %vm530_vm7, 1.0, %v1876_v50 }
 0x1b7   :  { %v347_v35 = vsub.f32 %v2167_v8, %v331_v17  ;;  %1749 = vmatpush3.bf16.msra.mxu1 %v2268_v29  ;;  %1781 = vmatpush3.bf16.msra.mxu0 %v2268_v29  ;;  %v433_v55 = vpop.permute.xlu0 %432 }
 0x1b8   :  { %v2278_v4 = vpack.c.bf16 %v361_v27, %v360_v33  ;;  %v346_v43 = vsub.f32 %v2164_v6, %v330_v34  ;;  %v2294_v6 = vpop.permute.xlu1 %504  ;;  %vm451_vm14 = vcmp.eq.s32.totalorder %v433_v55, %v2205_v24 }
 0x1b9   :  { %v363_v36 = vmax.f32 %v347_v35, 0.0  ;;  %vm531_vm9 = vcmp.eq.s32.totalorder %v2294_v6, %v2205_v24 }
 0x1ba   :  { %v362_v37 = vmax.f32 %v346_v43, 0.0  ;;  %1751 = vmatprep.subr.bf16.mxu1 %v2278_v4  ;;  %1783 = vmatprep.subr.bf16.mxu0 %v2278_v4  ;;  %v1406_v39 = vsel %vm531_vm9, 1.0, %v1876_v50 }
 0x1bb   :  { %1753 = vmatpush3.bf16.msra.mxu1 %v2278_v4  ;;  %1785 = vmatpush3.bf16.msra.mxu0 %v2278_v4  ;;  %v436_v40 = vpop.permute.xlu0 %435 }
 0x1bc   :  { %v1754_v8 = vpack.c.bf16 %v363_v36, %v362_v37  ;;  %v2325_v14 = vpop.permute.xlu1 %507  ;;  %vm452_vm15 = vcmp.eq.s32.totalorder %v436_v40, %v2205_v24 }
 0x1bd   :  { %vm532_vm11 = vcmp.eq.s32.totalorder %v2325_v14, %v2205_v24 }
 0x1be   :  { %1755 = vmatprep.subr.bf16.mxu1 %v1754_v8  ;;  %1787 = vmatprep.subr.bf16.mxu0 %v1754_v8  ;;  %v1407_v6 = vsel %vm532_vm11, 1.0, %v1876_v50 }
 0x1bf   :  { %1757 = vmatpush3.bf16.msra.mxu1 %v1754_v8  ;;  %1789 = vmatpush3.bf16.msra.mxu0 %v1754_v8  ;;  %v439_v16 = vpop.permute.xlu0 %438 }
 0x1c0   :  { %1790 = vmatprep.subr.bf16.mxu1 %v2225_v25  ;;  %vm453_vm1 = vcmp.eq.s32.totalorder %v439_v16, %v2205_v24  ;;  %v2371_v18 = vpop.permute.xlu1 %513 }
 0x1c2   :  { %1627 = vmatmul.mubr.msk.f32.vlgmr.msra.gmra.mrb[0].mxu1 %vm444_vm2, %v1875_v28  ;;  %1677 = vmatmul.mubr.msk.f32.vlgmr.msra.gmra.mrb[16].mxu0 %vm528_vm3, %v1875_v28 }
 0x1c3   :  { %1629 = vmatprep.mubr.msk.f32.mxu1 %vm445_vm4, %v1875_v28  ;;  %1798 = vmatpush3.bf16.msra.mxu1 %v2225_v25  ;;  %v442_v58 = vpop.permute.xlu0 %441 }
 0x1c4   :  { %1679 = vmatprep.mubr.msk.f32.mxu0 %vm529_vm5, %v1875_v28  ;;  %1791 = vmatprep.subr.bf16.mxu1 %v2235_v38  ;;  %vm454_vm2 = vcmp.eq.s32.totalorder %v442_v58, %v2205_v24  ;;  %v2377_v25 = vpop.permute.xlu1 %519 }
 0x1c6   :  { %1630 = vmatmul.mubr.msk.f32.gmra.mrb[2].mxu1 %vm446_vm6, %v1875_v28  ;;  %1680 = vmatmul.mubr.msk.f32.gmra.mrb[18].mxu0 %vm530_vm7, %v1875_v28  ;;  %vm534_vm6 = vcmp.eq.s32.totalorder %v2371_v18, %v2205_v24 }
 0x1c7   :  { %1632 = vmatprep.mubr.msk.f32.mxu1 %vm447_vm8, %v1875_v28  ;;  %1799 = vmatpush3.bf16.msra.mxu1 %v2235_v38  ;;  %v2359_v59 = vpop.permute.xlu0 %510 }
 0x1c8   :  { %1682 = vmatprep.mubr.msk.f32.mxu0 %vm531_vm9, %v1875_v28  ;;  %1792 = vmatprep.subr.bf16.mxu1 %v2242_v46  ;;  %vm533_vm4 = vcmp.eq.s32.totalorder %v2359_v59, %v2205_v24  ;;  %v2403_v41 = vpop.permute.xlu1 %525 }
 0x1ca   :  { %1633 = vmatmul.mubr.msk.f32.gmra.mrb[4].mxu1 %vm448_vm10, %v1875_v28  ;;  %1683 = vmatmul.mubr.msk.f32.gmra.mrb[20].mxu0 %vm532_vm11, %v1875_v28  ;;  %vm536_vm10 = vcmp.eq.s32.totalorder %v2377_v25, %v2205_v24 }
 0x1cb   :  { %1635 = vmatprep.mubr.msk.f32.mxu1 %vm449_vm12, %v1875_v28  ;;  %1800 = vmatpush3.bf16.msra.mxu1 %v2242_v46  ;;  %v2373_v22 = vpop.permute.xlu0 %516 }
 0x1cc   :  { %1793 = vmatprep.subr.bf16.mxu1 %v2250_v60  ;;  %vm535_vm8 = vcmp.eq.s32.totalorder %v2373_v22, %v2205_v24  ;;  %v580_v42 = vpop.permute.xlu1 %579 }
 0x1ce   :  { %1636 = vmatmul.mubr.msk.f32.gmra.mrb[6].mxu1 %vm450_vm13, %v1875_v28  ;;  %vm538_vm13 = vcmp.eq.s32.totalorder %v2403_v41, %v2205_v24 }
 0x1cf   :  { %1638 = vmatprep.mubr.msk.f32.mxu1 %vm451_vm14, %v1875_v28  ;;  %1801 = vmatpush3.bf16.msra.mxu1 %v2250_v60  ;;  %v2391_v38 = vpop.permute.xlu0 %522  ;;  %vm612_vm14 = vcmp.eq.s32.totalorder %v580_v42, %v2205_v24 }
 0x1d0   :  { %1794 = vmatprep.subr.bf16.mxu1 %v2260_v7  ;;  %vm537_vm12 = vcmp.eq.s32.totalorder %v2391_v38, %v2205_v24  ;;  %v1415_v46 = vsel %vm612_vm14, 1.0, %v1876_v50 }
 0x1d2   :  { %1639 = vmatmul.mubr.msk.f32.gmra.mrb[8].mxu1 %vm452_vm15, %v1875_v28 }
 0x1d3   :  { %1641 = vmatprep.mubr.msk.f32.mxu1 %vm453_vm1, %v1875_v28  ;;  %1802 = vmatpush3.bf16.msra.mxu1 %v2260_v7  ;;  %v577_v44 = vpop.permute.xlu0 %576 }
 0x1d4   :  { %1795 = vmatprep.subr.bf16.mxu1 %v2268_v29  ;;  %vm611_vm1 = vcmp.eq.s32.totalorder %v577_v44, %v2205_v24 }
 0x1d5   :  { %v1414_v0 = vsel %vm611_vm1, 1.0, %v1876_v50 }
 0x1d6   :  { %1642 = vmatmul.mubr.msk.f32.gmra.mrb[10].mxu1 %vm454_vm2, %v1875_v28  ;;  %vm380_vm2 = vcmask 7168  }
 0x1d7   :  { %1803 = vmatpush3.bf16.msra.mxu1 %v2268_v29  ;;  %1685 = vmatprep.mubr.msk.f32.mxu1 %vm533_vm4, %v1875_v28  ;;  %v583_v63 = vpop.permute.xlu0 %582  ;;  %382 = vst.msk [vmem:[#allocation3 + $0x8] sm:$0xff] %vm380_vm2, %v1876_v50  ;;  %381 = vst.msk [vmem:[#allocation3] sm:$0xff] %vm380_vm2, %v1876_v50 }
 0x1d8   :  { %1796 = vmatprep.subr.bf16.mxu1 %v2278_v4  ;;  %vm613_vm0 = vcmp.eq.s32.totalorder %v583_v63, %v2205_v24  ;;  %383 = vst.msk [vmem:[#allocation3 + $0x10] sm:$0xff] %vm380_vm2, %v1876_v50  ;;  %384 = vst.msk [vmem:[#allocation3 + $0x18] sm:$0xff] %vm380_vm2, %v1876_v50 }
 0x1d9   :  { %v1416_v11 = vsel %vm613_vm0, 1.0, %v1876_v50  ;;  %385 = vst.msk [vmem:[#allocation3 + $0x20] sm:$0xff] %vm380_vm2, %v1876_v50  ;;  %386 = vst.msk [vmem:[#allocation3 + $0x28] sm:$0xff] %vm380_vm2, %v1876_v50 }
 0x1da   :  { %387 = vst.msk [vmem:[#allocation3 + $0x30] sm:$0xff] %vm380_vm2, %v1876_v50  ;;  %388 = vst.msk [vmem:[#allocation3 + $0x38] sm:$0xff] %vm380_vm2, %v1876_v50 }
 0x1db   :  { %1804 = vmatpush3.bf16.msra.mxu1 %v2278_v4  ;;  %v589_v33 = vpop.permute.xlu0 %588  ;;  %389 = vst.msk [vmem:[#allocation3 + $0x40] sm:$0xff] %vm380_vm2, %v1876_v50  ;;  %390 = vst.msk [vmem:[#allocation3 + $0x48] sm:$0xff] %vm380_vm2, %v1876_v50 }
 0x1dc   :  { %1797 = vmatprep.subr.bf16.mxu1 %v1754_v8  ;;  %vm615_vm5 = vcmp.eq.s32.totalorder %v589_v33, %v2205_v24  ;;  %391 = vst.msk [vmem:[#allocation3 + $0x50] sm:$0xff] %vm380_vm2, %v1876_v50  ;;  %392 = vst.msk [vmem:[#allocation3 + $0x58] sm:$0xff] %vm380_vm2, %v1876_v50 }
 0x1dd   :  { %v1418_v43 = vsel %vm615_vm5, 1.0, %v1876_v50 }
 0x1df   :  { %1805 = vmatpush3.bf16.msra.mxu1 %v1754_v8  ;;  %v595_v8 = vpop.permute.xlu0 %594 }
 0x1e0   :  { %vm617_vm7 = vcmp.eq.s32.totalorder %v595_v8, %v2205_v24 }
 0x1e1   :  { %v1420_v58 = vsel %vm617_vm7, 1.0, %v1876_v50 }
 0x1e2   :  { %1686 = vmatmul.mubr.msk.f32.vlgmr.msra.gmra.mrb[12].mxu1 %vm534_vm6, %v1875_v28 }
 0x1e3   :  { %1688 = vmatprep.mubr.msk.f32.mxu1 %vm535_vm8, %v1875_v28  ;;  %v601_v14 = vpop.permute.xlu0 %600 }
 0x1e4   :  { %vm619_vm11 = vcmp.eq.s32.totalorder %v601_v14, %v2205_v24 }
 0x1e6   :  { %1689 = vmatmul.mubr.msk.f32.gmra.mrb[14].mxu1 %vm536_vm10, %v1875_v28 }
 0x1e7   :  { %1691 = vmatprep.mubr.msk.f32.mxu1 %vm537_vm12, %v1875_v28 }
 0x1ea   :  { %1692 = vmatmul.mubr.msk.f32.gmra.mrb[16].mxu1 %vm538_vm13, %v1875_v28  ;;  %v586_v28 = vpop.permute.xlu1 %585 }
 0x1eb   :  { %vm614_vm15 = vcmp.eq.s32.totalorder %v586_v28, %v2205_v24 }
 0x1ec   :  { %v1417_v2 = vsel %vm614_vm15, 1.0, %v1876_v50 }
 0x1ee   :  { %v592_v29 = vpop.permute.xlu1 %591 }
 0x1ef   :  { %vm616_vm3 = vcmp.eq.s32.totalorder %v592_v29, %v2205_v24  ;;  %v1413_v29 = vsel %vm538_vm13, 1.0, %v1876_v50 }
 0x1f0   :  { %v1419_v32 = vsel %vm616_vm3, 1.0, %v1876_v50 }
 0x295   :  { %v1628_v45 = vpop.f32.mrb[0].mxu1  ;;  %v1678_v47 = vpop.f32.mrb[16].mxu0 }
 0x296   :  { %v986_v49 = vmul.f32 %v1678_v47, %v1415_v46  ;;  %v729_v51 = vpop.f32.mrb[1].mxu1  ;;  %v854_v52 = vpop.f32.mrb[17].mxu0  ;;  %v950_v20 = vmul.f32 %v1628_v45, %v1415_v46  ;;  %v914_v62 = vmul.f32 %v1628_v45, %v1403_v10  ;;  %v1408_v47 = vsel %vm533_vm4, 1.0, %v1876_v50 }
 0x297   :  { %v913_v30 = vmul.f32 %v1402_v48, %v729_v51  ;;  %v949_v9 = vmul.f32 %v1414_v0, %v729_v51  ;;  %v985_v15 = vmul.f32 %v1414_v0, %v854_v52  ;;  %v598_v46 = vpop.permute.xlu1 %597 }
 0x298   :  { %999 = vadd.xlane.f32.xlu0 %v986_v49  ;;  %963 = vadd.xlane.f32.xlu1 %v950_v20  ;;  %vm618_vm9 = vcmp.eq.s32.totalorder %v598_v46, %v2205_v24 }
 0x299   :  { %v1631_v60 = vpop.f32.mrb[2].mxu1  ;;  %v1681_v12 = vpop.f32.mrb[18].mxu0  ;;  %v1421_v20 = vsel %vm618_vm9, 1.0, %v1876_v50 }
 0x29a   :  { %v739_v26 = vpop.f32.mrb[3].mxu1  ;;  %v864_v61 = vpop.f32.mrb[19].mxu0  ;;  %v988_v5 = vmul.f32 %v1681_v12, %v1417_v2  ;;  %v952_v27 = vmul.f32 %v1631_v60, %v1417_v2  ;;  %v916_v4 = vmul.f32 %v1631_v60, %v1405_v31 }
 0x29b   :  { %v951_v21 = vmul.f32 %v1416_v11, %v739_v26  ;;  %v915_v17 = vmul.f32 %v1404_v1, %v739_v26  ;;  %v987_v36 = vmul.f32 %v1416_v11, %v864_v61  ;;  %v607_v12 = vpop.permute.xlu0 %606  ;;  %v1409_v26 = vsel %vm534_vm6, 1.0, %v1876_v50  ;;  %v604_v61 = vpop.permute.xlu1 %603 }
 0x29c   :  { %927 = vadd.xlane.f32.xlu0 %v914_v62  ;;  %925 = vadd.xlane.f32.xlu1 %v913_v30  ;;  %v1422_v30 = vsel %vm619_vm11, 1.0, %v1876_v50  ;;  %v1410_v62 = vsel %vm535_vm8, 1.0, %v1876_v50  ;;  %vm620_vm4 = vcmp.eq.s32.totalorder %v604_v61, %v2205_v24  ;;  %vm621_vm14 = vcmp.eq.s32.totalorder %v607_v12, %v2205_v24 }
 0x29d   :  { %v2425_v3 = vpop.f32.mrb[4].mxu1  ;;  %v1684_v54 = vpop.f32.mrb[20].mxu0  ;;  %v1423_v2 = vsel %vm620_vm4, 1.0, %v1876_v50  ;;  %v1424_v18 = vsel %vm621_vm14, 1.0, %v1876_v50 }
 0x29e   :  { %v749_v7 = vpop.f32.mrb[5].mxu1  ;;  %v2428_v56 = vpop.f32.mrb[21].mxu0  ;;  %v990_v53 = vmul.f32 %v1684_v54, %v1419_v32  ;;  %v954_v55 = vmul.f32 %v2425_v3, %v1419_v32  ;;  %v918_v44 = vmul.f32 %v2425_v3, %v1407_v6 }
 0x29f   :  { %v953_v37 = vmul.f32 %v1418_v43, %v749_v7  ;;  %v917_v40 = vmul.f32 %v1406_v39, %v749_v7  ;;  %v989_v49 = vmul.f32 %v1418_v43, %v2428_v56  ;;  %v610_v22 = vpop.permute.xlu1 %609  ;;  %v1412_v7 = vsel %vm537_vm12, 1.0, %v1876_v50 }
 0x2a0   :  { %961 = vadd.xlane.f32.xlu0 %v949_v9  ;;  %1003 = vadd.xlane.f32.xlu1 %v988_v5  ;;  %v1411_v5 = vsel %vm536_vm10, 1.0, %v1876_v50  ;;  %vm622_vm6 = vcmp.eq.s32.totalorder %v610_v22, %v2205_v24 }
 0x2a1   :  { %v2431_v13 = vpop.f32.mrb[6].mxu1  ;;  %v1425_v11 = vsel %vm622_vm6, 1.0, %v1876_v50 }
 0x2a2   :  { %v2433_v19 = vpop.f32.mrb[7].mxu1  ;;  %v956_v10 = vmul.f32 %v2431_v13, %v1421_v20  ;;  %v920_v63 = vmul.f32 %v2431_v13, %v1409_v26 }
 0x2a3   :  { %v955_v45 = vmul.f32 %v1420_v58, %v2433_v19  ;;  %v919_v52 = vmul.f32 %v1408_v47, %v2433_v19 }
 0x2a4   :  { %997 = vadd.xlane.f32.xlu0 %v985_v15  ;;  %965 = vadd.xlane.f32.xlu1 %v951_v21 }
 0x2a5   :  { %v2439_v57 = vpop.f32.mrb[8].mxu1 }
 0x2a6   :  { %v2442_v23 = vpop.f32.mrb[9].mxu1  ;;  %v958_v54 = vmul.f32 %v2439_v57, %v1423_v2  ;;  %v922_v9 = vmul.f32 %v2439_v57, %v1411_v5 }
 0x2a7   :  { %v957_v60 = vmul.f32 %v1422_v30, %v2442_v23  ;;  %v921_v0 = vmul.f32 %v1410_v62, %v2442_v23 }
 0x2a8   :  { %967 = vadd.xlane.f32.xlu0 %v952_v27  ;;  %929 = vadd.xlane.f32.xlu1 %v915_v17 }
 0x2a9   :  { %v2449_v34 = vpop.f32.mrb[10].mxu1 }
 0x2aa   :  { %v2452_v35 = vpop.f32.mrb[11].mxu1  ;;  %v960_v15 = vmul.f32 %v2449_v34, %v1425_v11  ;;  %v924_v57 = vmul.f32 %v2449_v34, %v1413_v29 }
 0x2ab   :  { %v959_v3 = vmul.f32 %v1424_v18, %v2452_v35  ;;  %v923_v56 = vmul.f32 %v1412_v7, %v2452_v35 }
 0x2ac   :  { %931 = vadd.xlane.f32.xlu0 %v916_v4  ;;  %1007 = vadd.xlane.f32.xlu1 %v990_v53 }
 0x2b0   :  { %1001 = vadd.xlane.f32.xlu0 %v987_v36  ;;  %969 = vadd.xlane.f32.xlu1 %v953_v37 }
 0x2b4   :  { %971 = vadd.xlane.f32.xlu0 %v954_v55  ;;  %933 = vadd.xlane.f32.xlu1 %v917_v40 }
 0x2b5   :  { %v1687_v16 = vpop.f32.mrb[12].mxu1 }
 0x2b6   :  { %v884_v42 = vpop.f32.mrb[13].mxu1  ;;  %v992_v13 = vmul.f32 %v1687_v16, %v1421_v20 }
 0x2b7   :  { %v991_v25 = vmul.f32 %v1420_v58, %v884_v42 }
 0x2b8   :  { %935 = vadd.xlane.f32.xlu0 %v918_v44  ;;  %973 = vadd.xlane.f32.xlu1 %v955_v45 }
 0x2b9   :  { %v1690_v48 = vpop.f32.mrb[14].mxu1 }
 0x2ba   :  { %v894_v51 = vpop.f32.mrb[15].mxu1  ;;  %v994_v19 = vmul.f32 %v1690_v48, %v1423_v2  ;;  %v1289_v48 = vld [vmem:[#allocation3 + $0x8] sm:$0xff] }
 0x2bb   :  { %v993_v38 = vmul.f32 %v1422_v30, %v894_v51 }
 0x2bc   :  { %1005 = vadd.xlane.f32.xlu0 %v989_v49  ;;  %937 = vadd.xlane.f32.xlu1 %v919_v52 }
 0x2bd   :  { %v1693_v28 = vpop.f32.mrb[16].mxu1 }
 0x2be   :  { %v904_v59 = vpop.f32.mrb[17].mxu1  ;;  %v996_v21 = vmul.f32 %v1693_v28, %v1425_v11 }
 0x2bf   :  { %v995_v1 = vmul.f32 %v1424_v18, %v904_v59 }
 0x2c0   :  { %975 = vadd.xlane.f32.xlu0 %v956_v10  ;;  %977 = vadd.xlane.f32.xlu1 %v957_v60 }
 0x2c4   :  { %939 = vadd.xlane.f32.xlu0 %v920_v63  ;;  %941 = vadd.xlane.f32.xlu1 %v921_v0 }
 0x2c8   :  { %979 = vadd.xlane.f32.xlu0 %v958_v54  ;;  %981 = vadd.xlane.f32.xlu1 %v959_v3 }
 0x2cc   :  { %943 = vadd.xlane.f32.xlu0 %v922_v9  ;;  %945 = vadd.xlane.f32.xlu1 %v923_v56 }
 0x2d0   :  { %983 = vadd.xlane.f32.xlu0 %v960_v15  ;;  %1011 = vadd.xlane.f32.xlu1 %v992_v13 }
 0x2d4   :  { %1009 = vadd.xlane.f32.xlu0 %v991_v25  ;;  %1015 = vadd.xlane.f32.xlu1 %v994_v19  ;;  %v1288_v25 = vld [vmem:[#allocation3] sm:$0xff] }
 0x2d8   :  { %1013 = vadd.xlane.f32.xlu0 %v993_v38  ;;  %1019 = vadd.xlane.f32.xlu1 %v996_v21 }
 0x2dc   :  { %1017 = vadd.xlane.f32.xlu0 %v995_v1 }
 0x2e0   :  { %947 = vadd.xlane.f32.xlu0 %v924_v57 }
 0x325   :  { %v1000_v23 = vpop.xlane.xlu0 %999  ;;  %v964_v27 = vpop.xlane.xlu1 %963 }
 0x326   :  { %v1106_v17 = vmin.f32 %v964_v27, %v1000_v23 }
 0x328   :  { %1814 = vrsqrt.f32 %v1106_v17  ;;  %vm1126_vm8 = vcmp.eq.f32.partialorder %v1106_v17, inf  ;;  %v1129_v8 = vand.u32 2147483648, %v1106_v17  ;;  %vm1128_vm12 = vcmp.eq.f32.partialorder %v1106_v17, 0.0 }
 0x329   :  { %v928_v31 = vpop.xlane.xlu0 %927  ;;  %v926_v33 = vpop.xlane.xlu1 %925 }
 0x32a   :  { %1816 = vrsqrt.f32 %v928_v31  ;;  %vm1030_vm10 = vcmp.eq.f32.partialorder %v928_v31, inf  ;;  %v1033_v55 = vand.u32 2147483648, %v928_v31  ;;  %vm1032_vm13 = vcmp.eq.f32.partialorder %v928_v31, 0.0 }
 0x32b   :  { %1818 = vrsqrt.f32 %v926_v33  ;;  %vm1023_vm15 = vcmp.eq.f32.partialorder %v926_v33, inf  ;;  %v1026_v60 = vand.u32 2147483648, %v926_v33  ;;  %vm1025_vm0 = vcmp.eq.f32.partialorder %v926_v33, 0.0 }
 0x32d   :  { %v962_v32 = vpop.xlane.xlu0 %961  ;;  %v1004_v53 = vpop.xlane.xlu1 %1003 }
 0x331   :  { %v998_v35 = vpop.xlane.xlu0 %997  ;;  %v966_v4 = vpop.xlane.xlu1 %965 }
 0x332   :  { %v1815_v43 = vpop.eup %1814  ;;  %v1105_v36 = vmin.f32 %v962_v32, %v998_v35 }
 0x333   :  { %v1125_v37 = vmul.f32 %v1815_v43, %v1106_v17 }
 0x334   :  { %v1817_v24 = vpop.eup %1816  ;;  %1820 = vrsqrt.f32 %v1105_v36  ;;  %vm1119_vm1 = vcmp.eq.f32.partialorder %v1105_v36, inf  ;;  %v1122_v12 = vand.u32 2147483648, %v1105_v36  ;;  %vm1121_vm3 = vcmp.eq.f32.partialorder %v1105_v36, 0.0 }
 0x335   :  { %v1127_v41 = vsel %vm1126_vm8, %v1106_v17, %v1125_v37  ;;  %v1029_v50 = vmul.f32 %v1817_v24, %v928_v31  ;;  %v968_v34 = vpop.xlane.xlu0 %967  ;;  %v2540_v39 = vpop.xlane.xlu1 %929 }
 0x336   :  { %v2542_v40 = vmin.f32 %v968_v34, %v1004_v53  ;;  %v1819_v16 = vpop.eup %1818  ;;  %v1130_v58 = vsel %vm1128_vm12, %v1129_v8, %v1127_v41  ;;  %vm1037_vm4 = vcmp.eq.f32.partialorder %v2540_v39, inf  ;;  %v1040_v43 = vand.u32 2147483648, %v2540_v39 }
 0x337   :  { %v1031_v6 = vsel %vm1030_vm10, %v928_v31, %v1029_v50  ;;  %v1022_v14 = vmul.f32 %v1819_v16, %v926_v33  ;;  %vm1039_vm6 = vcmp.eq.f32.partialorder %v2540_v39, 0.0 }
 0x338   :  { %v1034_v42 = vsel %vm1032_vm13, %v1033_v55, %v1031_v6  ;;  %1822 = vrsqrt.f32 %v2542_v40  ;;  %vm1140_vm5 = vcmp.eq.f32.partialorder %v2542_v40, inf  ;;  %v1143_v7 = vand.u32 2147483648, %v2542_v40 }
 0x339   :  { %v1202_v44 = vsub.f32 %v1034_v42, %v1130_v58  ;;  %1824 = vrsqrt.f32 %v2540_v39  ;;  %v932_v45 = vpop.xlane.xlu0 %931  ;;  %v1008_v46 = vpop.xlane.xlu1 %1007  ;;  %v1024_v59 = vsel %vm1023_vm15, %v926_v33, %v1022_v14  ;;  %vm1142_vm7 = vcmp.eq.f32.partialorder %v2542_v40, 0.0 }
 0x33a   :  { %1826 = vrsqrt.f32 %v932_v45  ;;  %v1027_v0 = vsel %vm1025_vm0, %v1026_v60, %v1024_v59  ;;  %vm1044_vm9 = vcmp.eq.f32.partialorder %v932_v45, inf  ;;  %v1047_v19 = vand.u32 2147483648, %v932_v45 }
 0x33b   :  { %v1214_v47 = vadd.f32 1.0, %v1202_v44  ;;  %vm1046_vm11 = vcmp.eq.f32.partialorder %v932_v45, 0.0 }
 0x33d   :  { %v1226_v49 = vmax.f32 %v1214_v47, 0.0  ;;  %v1002_v51 = vpop.xlane.xlu0 %1001  ;;  %v970_v52 = vpop.xlane.xlu1 %969 }
 0x33e   :  { %v1821_v20 = vpop.eup %1820  ;;  %v2546_v30 = vmin.f32 %v966_v4, %v1002_v51 }
 0x33f   :  { %v1301_v28 = vadd.f32 %v1289_v48, %v1226_v49  ;;  %v1118_v10 = vmul.f32 %v1821_v20, %v1105_v36  ;;  %v1290_v49 = vld [vmem:[#allocation3 + $0x10] sm:$0xff] }
 0x340   :  { %1828 = vrsqrt.f32 %v2546_v30  ;;  %vm1133_vm14 = vcmp.eq.f32.partialorder %v2546_v30, inf  ;;  %v1136_v37 = vand.u32 2147483648, %v2546_v30  ;;  %vm1135_vm8 = vcmp.eq.f32.partialorder %v2546_v30, 0.0 }
 0x341   :  { %1314 = vst.msk [vmem:[#allocation3 + $0x8] sm:$0xff] %vm380_vm2, %v1301_v28  ;;  %v1120_v26 = vsel %vm1119_vm1, %v1105_v36, %v1118_v10  ;;  %v972_v61 = vpop.xlane.xlu0 %971  ;;  %v2550_v62 = vpop.xlane.xlu1 %933  ;;  %v1291_v36 = vld [vmem:[#allocation3 + $0x18] sm:$0xff] }
 0x342   :  { %v1823_v63 = vpop.eup %1822  ;;  %v1123_v2 = vsel %vm1121_vm3, %v1122_v12, %v1120_v26  ;;  %v2552_v18 = vmin.f32 %v972_v61, %v1008_v46  ;;  %vm1051_vm1 = vcmp.eq.f32.partialorder %v2550_v62, inf  ;;  %vm1053_vm3 = vcmp.eq.f32.partialorder %v2550_v62, 0.0 }
 0x343   :  { %v1825_v3 = vpop.eup %1824  ;;  %v1201_v54 = vsub.f32 %v1027_v0, %v1123_v2  ;;  %v1139_v22 = vmul.f32 %v1823_v63, %v2542_v40 }
 0x344   :  { %v1827_v5 = vpop.eup %1826  ;;  %1830 = vrsqrt.f32 %v2552_v18  ;;  %v1036_v21 = vmul.f32 %v1825_v3, %v2540_v39  ;;  %vm1154_vm10 = vcmp.eq.f32.partialorder %v2552_v18, inf  ;;  %vm1156_vm12 = vcmp.eq.f32.partialorder %v2552_v18, 0.0  ;;  %v1293_v3 = vld [vmem:[#allocation3 + $0x28] sm:$0xff] }
 0x345   :  { %v1213_v56 = vadd.f32 1.0, %v1201_v54  ;;  %v1141_v9 = vsel %vm1140_vm5, %v2542_v40, %v1139_v22  ;;  %v1043_v11 = vmul.f32 %v1827_v5, %v932_v45  ;;  %1832 = vrsqrt.f32 %v2550_v62  ;;  %v2560_v13 = vpop.xlane.xlu0 %935  ;;  %v2562_v15 = vpop.xlane.xlu1 %973 }
 0x346   :  { %1834 = vrsqrt.f32 %v2560_v13  ;;  %v1144_v29 = vsel %vm1142_vm7, %v1143_v7, %v1141_v9  ;;  %v1038_v53 = vsel %vm1037_vm4, %v2540_v39, %v1036_v21  ;;  %vm1058_vm13 = vcmp.eq.f32.partialorder %v2560_v13, inf }
 0x347   :  { %v1225_v38 = vmax.f32 %v1213_v56, 0.0  ;;  %v1045_v1 = vsel %vm1044_vm9, %v932_v45, %v1043_v11  ;;  %v1041_v55 = vsel %vm1039_vm6, %v1040_v43, %v1038_v53  ;;  %v1157_v45 = vand.u32 2147483648, %v2552_v18 }
 0x348   :  { %v1048_v57 = vsel %vm1046_vm11, %v1047_v19, %v1045_v1  ;;  %vm1060_vm15 = vcmp.eq.f32.partialorder %v2560_v13, 0.0  ;;  %v1061_v51 = vand.u32 2147483648, %v2560_v13  ;;  %v1292_v1 = vld [vmem:[#allocation3 + $0x20] sm:$0xff] }
 0x349   :  { %v1300_v23 = vadd.f32 %v1288_v25, %v1225_v38  ;;  %v1204_v27 = vsub.f32 %v1048_v57, %v1144_v29  ;;  %v1006_v17 = vpop.xlane.xlu0 %1005  ;;  %v2567_v31 = vpop.xlane.xlu1 %937 }
 0x34a   :  { %v1829_v33 = vpop.eup %1828  ;;  %v2570_v32 = vmin.f32 %v970_v52, %v1006_v17  ;;  %vm1065_vm7 = vcmp.eq.f32.partialorder %v2567_v31, inf  ;;  %vm1067_vm9 = vcmp.eq.f32.partialorder %v2567_v31, 0.0 }
 0x34b   :  { %1313 = vst.msk [vmem:[#allocation3] sm:$0xff] %vm380_vm2, %v1300_v23  ;;  %v1216_v35 = vadd.f32 1.0, %v1204_v27  ;;  %v1132_v4 = vmul.f32 %v1829_v33, %v2546_v30  ;;  %v1329_v23 = vld [vmem:[#allocation3 + $0x8] sm:$0xff] }
 0x34c   :  { %1836 = vrsqrt.f32 %v2570_v32  ;;  %vm1147_vm0 = vcmp.eq.f32.partialorder %v2570_v32, inf  ;;  %v1150_v54 = vand.u32 2147483648, %v2570_v32  ;;  %vm1149_vm5 = vcmp.eq.f32.partialorder %v2570_v32, 0.0 }
 0x34d   :  { %v1228_v24 = vmax.f32 %v1216_v35, 0.0  ;;  %v1134_v41 = vsel %vm1133_vm14, %v2546_v30, %v1132_v4  ;;  %v2582_v50 = vpop.xlane.xlu0 %975  ;;  %v2584_v34 = vpop.xlane.xlu1 %977  ;;  %1838 = vrsqrt.f32 %v2567_v31 }
 0x34e   :  { %v1831_v8 = vpop.eup %1830  ;;  %v1137_v40 = vsel %vm1135_vm8, %v1136_v37, %v1134_v41  ;;  %v1341_v37 = vsel %vm380_vm2, %v1329_v23, 0.0 }
 0x34f   :  { %v1833_v6 = vpop.eup %1832  ;;  %v1303_v16 = vadd.f32 %v1291_v36, %v1228_v24  ;;  %v1203_v58 = vsub.f32 %v1041_v55, %v1137_v40  ;;  %v1153_v42 = vmul.f32 %v1831_v8, %v2552_v18  ;;  %v1068_v24 = vand.u32 2147483648, %v2567_v31 }
 0x350   :  { %v1835_v44 = vpop.eup %1834  ;;  %v1050_v20 = vmul.f32 %v1833_v6, %v2550_v62 }
 0x351   :  { %1316 = vst.msk [vmem:[#allocation3 + $0x18] sm:$0xff] %vm380_vm2, %v1303_v16  ;;  %v1215_v39 = vadd.f32 1.0, %v1203_v58  ;;  %v1155_v46 = vsel %vm1154_vm10, %v2552_v18, %v1153_v42  ;;  %v1057_v47 = vmul.f32 %v1835_v44, %v2560_v13  ;;  %v2592_v14 = vpop.xlane.xlu0 %939  ;;  %v2594_v48 = vpop.xlane.xlu1 %941  ;;  %v1054_v18 = vand.u32 2147483648, %v2550_v62 }
 0x352   :  { %v1158_v28 = vsel %vm1156_vm12, %v1157_v45, %v1155_v46  ;;  %v1052_v63 = vsel %vm1051_vm1, %v2550_v62, %v1050_v20  ;;  %1840 = vrsqrt.f32 %v2592_v14  ;;  %v1328_v35 = vld [vmem:[#allocation3] sm:$0xff]  ;;  %vm1072_vm11 = vcmp.eq.f32.partialorder %v2592_v14, inf }
 0x353   :  { %v1227_v52 = vmax.f32 %v1215_v39, 0.0  ;;  %v1059_v30 = vsel %vm1058_vm13, %v2560_v13, %v1057_v47  ;;  %1842 = vrsqrt.f32 %v2594_v48  ;;  %v1055_v9 = vsel %vm1053_vm3, %v1054_v18, %v1052_v63 }
 0x354   :  { %v1062_v59 = vsel %vm1060_vm15, %v1061_v51, %v1059_v30  ;;  %v1340_v8 = vsel %vm380_vm2, %v1328_v35, 0.0  ;;  %vm1074_vm4 = vcmp.eq.f32.partialorder %v2592_v14, 0.0  ;;  %v1075_v55 = vand.u32 2147483648, %v2592_v14 }
 0x355   :  { %v1302_v10 = vadd.f32 %v1290_v49, %v1227_v52  ;;  %v1206_v60 = vsub.f32 %v1062_v59, %v1158_v28  ;;  %v980_v12 = vpop.xlane.xlu0 %979  ;;  %v2603_v26 = vpop.xlane.xlu1 %981  ;;  %vm1079_vm14 = vcmp.eq.f32.partialorder %v2594_v48, inf  ;;  %vm1081_vm6 = vcmp.eq.f32.partialorder %v2594_v48, 0.0 }
 0x356   :  { %v1837_v61 = vpop.eup %1836  ;;  %v1082_v45 = vand.u32 2147483648, %v2594_v48  ;;  %v1342_v47 = vadd.f32 %v1341_v37, %v1340_v8 }
 0x357   :  { %1315 = vst.msk [vmem:[#allocation3 + $0x10] sm:$0xff] %vm380_vm2, %v1302_v10  ;;  %v1218_v0 = vadd.f32 1.0, %v1206_v60  ;;  %v1146_v2 = vmul.f32 %v1837_v61, %v2570_v32  ;;  %v1839_v19 = vpop.eup %1838 }
 0x358   :  { %v1064_v27 = vmul.f32 %v1839_v19, %v2567_v31 }
 0x359   :  { %v1230_v22 = vmax.f32 %v1218_v0, 0.0  ;;  %v1148_v5 = vsel %vm1147_vm0, %v2570_v32, %v1146_v2  ;;  %v2617_v7 = vpop.xlane.xlu0 %943  ;;  %v2619_v56 = vpop.xlane.xlu1 %945 }
 0x35a   :  { %v1151_v11 = vsel %vm1149_vm5, %v1150_v54, %v1148_v5  ;;  %1844 = vrsqrt.f32 %v2617_v7  ;;  %v1066_v41 = vsel %vm1065_vm7, %v2567_v31, %v1064_v27  ;;  %vm1086_vm8 = vcmp.eq.f32.partialorder %v2617_v7, inf }
 0x35b   :  { %v1305_v13 = vadd.f32 %v1293_v3, %v1230_v22  ;;  %v1205_v25 = vsub.f32 %v1055_v9, %v1151_v11  ;;  %1846 = vrsqrt.f32 %v2619_v56  ;;  %v2657_v39 = vsel %vm1067_vm9, %v1068_v24, %v1066_v41 }
 0x35c   :  { %v1841_v17 = vpop.eup %1840  ;;  %vm1088_vm10 = vcmp.eq.f32.partialorder %v2617_v7, 0.0  ;;  %v1089_v52 = vand.u32 2147483648, %v2617_v7  ;;  %vm1093_vm12 = vcmp.eq.f32.partialorder %v2619_v56, inf  ;;  %vm1095_vm13 = vcmp.eq.f32.partialorder %v2619_v56, 0.0 }
 0x35d   :  { %1318 = vst.msk [vmem:[#allocation3 + $0x28] sm:$0xff] %vm380_vm2, %v1305_v13  ;;  %v1217_v38 = vadd.f32 1.0, %v1205_v25  ;;  %v984_v62 = vpop.xlane.xlu0 %983  ;;  %v1012_v21 = vpop.xlane.xlu1 %1011  ;;  %v1096_v61 = vand.u32 2147483648, %v2619_v56 }
 0x35e   :  { %v2625_v29 = vmin.f32 %v2582_v50, %v1012_v21  ;;  %v1843_v4 = vpop.eup %1842  ;;  %v1071_v50 = vmul.f32 %v1841_v17, %v2592_v14  ;;  %v1330_v46 = vld [vmem:[#allocation3 + $0x10] sm:$0xff] }
 0x35f   :  { %v1229_v57 = vmax.f32 %v1217_v38, 0.0  ;;  %v1078_v40 = vmul.f32 %v1843_v4, %v2594_v48  ;;  %v1343_v10 = vsel %vm380_vm2, %v1330_v46, 0.0 }
 0x360   :  { %1848 = vrsqrt.f32 %v2625_v29  ;;  %vm1168_vm15 = vcmp.eq.f32.partialorder %v2625_v29, inf  ;;  %vm1170_vm1 = vcmp.eq.f32.partialorder %v2625_v29, 0.0  ;;  %v2696_v18 = vadd.f32 %v1343_v10, %v1342_v47 }
 0x361   :  { %v1304_v33 = vadd.f32 %v1292_v1, %v1229_v57  ;;  %v1010_v32 = vpop.xlane.xlu0 %1009  ;;  %v1016_v53 = vpop.xlane.xlu1 %1015  ;;  %v1080_v31 = vsel %vm1079_vm14, %v2594_v48, %v1078_v40  ;;  %v1295_v57 = vld [vmem:[#allocation3 + $0x38] sm:$0xff] }
 0x362   :  { %v2630_v43 = vmin.f32 %v2562_v15, %v1010_v32  ;;  %v2632_v36 = vmin.f32 %v980_v12, %v1016_v53  ;;  %v1331_v15 = vld [vmem:[#allocation3 + $0x18] sm:$0xff]  ;;  %v2686_v0 = vsel %vm1081_vm6, %v1082_v45, %v1080_v31 }
 0x363   :  { %1317 = vst.msk [vmem:[#allocation3 + $0x20] sm:$0xff] %vm380_vm2, %v1304_v33  ;;  %v2661_v49 = vsel %vm380_vm2, %v1331_v15, 0.0 }
 0x364   :  { %1850 = vrsqrt.f32 %v2630_v43  ;;  %v1845_v44 = vpop.eup %1844  ;;  %vm1161_vm0 = vcmp.eq.f32.partialorder %v2630_v43, inf  ;;  %vm1163_vm3 = vcmp.eq.f32.partialorder %v2630_v43, 0.0  ;;  %v1164_v13 = vand.u32 2147483648, %v2630_v43 }
 0x365   :  { %1852 = vrsqrt.f32 %v2632_v36  ;;  %v1014_v6 = vpop.xlane.xlu0 %1013  ;;  %v1020_v16 = vpop.xlane.xlu1 %1019  ;;  %v1085_v28 = vmul.f32 %v1845_v44, %v2617_v7  ;;  %vm1182_vm5 = vcmp.eq.f32.partialorder %v2632_v36, inf  ;;  %vm1184_vm7 = vcmp.eq.f32.partialorder %v2632_v36, 0.0 }
 0x366   :  { %v2651_v58 = vmin.f32 %v2584_v34, %v1014_v6  ;;  %v2653_v42 = vmin.f32 %v984_v62, %v1020_v16  ;;  %v1847_v51 = vpop.eup %1846  ;;  %v1073_v34 = vsel %vm1072_vm11, %v2592_v14, %v1071_v50  ;;  %v1185_v19 = vand.u32 2147483648, %v2632_v36  ;;  %v1294_v50 = vld [vmem:[#allocation3 + $0x30] sm:$0xff]  ;;  %v1297_v16 = vld [vmem:[#allocation3 + $0x48] sm:$0xff] }
 0x367   :  { %v1076_v60 = vsel %vm1074_vm4, %v1075_v55, %v1073_v34  ;;  %v1092_v12 = vmul.f32 %v1847_v51, %v2619_v56  ;;  %v1087_v48 = vsel %vm1086_vm8, %v2617_v7, %v1085_v28 }
 0x368   :  { %1854 = vrsqrt.f32 %v2651_v58  ;;  %v1090_v38 = vsel %vm1088_vm10, %v1089_v52, %v1087_v48  ;;  %vm1175_vm9 = vcmp.eq.f32.partialorder %v2651_v58, inf  ;;  %vm1177_vm11 = vcmp.eq.f32.partialorder %v2651_v58, 0.0  ;;  %v1298_v48 = vld [vmem:[#allocation3 + $0x50] sm:$0xff] }
 0x369   :  { %1856 = vrsqrt.f32 %v2653_v42  ;;  %v1018_v20 = vpop.xlane.xlu0 %1017  ;;  %v1094_v5 = vsel %vm1093_vm12, %v2619_v56, %v1092_v12  ;;  %v1178_v56 = vand.u32 2147483648, %v2651_v58  ;;  %vm1196_vm4 = vcmp.eq.f32.partialorder %v2653_v42, inf }
 0x36a   :  { %v1849_v30 = vpop.eup %1848  ;;  %v2676_v59 = vmin.f32 %v2603_v26, %v1018_v20  ;;  %v1171_v26 = vand.u32 2147483648, %v2625_v29  ;;  %v1332_v35 = vld [vmem:[#allocation3 + $0x20] sm:$0xff]  ;;  %vm1198_vm14 = vcmp.eq.f32.partialorder %v2653_v42, 0.0  ;;  %v1199_v55 = vand.u32 2147483648, %v2653_v42 }
 0x36b   :  { %v1167_v63 = vmul.f32 %v1849_v30, %v2625_v29  ;;  %v1347_v40 = vsel %vm380_vm2, %v1332_v35, 0.0  ;;  %v1296_v30 = vld [vmem:[#allocation3 + $0x40] sm:$0xff] }
 0x36c   :  { %1858 = vrsqrt.f32 %v2676_v59  ;;  %vm1189_vm6 = vcmp.eq.f32.partialorder %v2676_v59, inf  ;;  %vm1191_vm8 = vcmp.eq.f32.partialorder %v2676_v59, 0.0 }
 0x36d   :  { %v1169_v2 = vsel %vm1168_vm15, %v2625_v29, %v1167_v63  ;;  %v2694_v14 = vpop.xlane.xlu0 %947  ;;  %v1097_v29 = vsel %vm1095_vm13, %v1096_v61, %v1094_v5 }
 0x36e   :  { %v1851_v3 = vpop.eup %1850  ;;  %v1172_v54 = vsel %vm1170_vm1, %v1171_v26, %v1169_v2  ;;  %1860 = vrsqrt.f32 %v2694_v14  ;;  %vm1100_vm10 = vcmp.eq.f32.partialorder %v2694_v14, inf  ;;  %v1103_v10 = vand.u32 2147483648, %v2694_v14 }
 0x36f   :  { %v1853_v22 = vpop.eup %1852  ;;  %v1208_v9 = vsub.f32 %v1076_v60, %v1172_v54  ;;  %v1160_v11 = vmul.f32 %v1851_v3, %v2630_v43  ;;  %vm1102_vm12 = vcmp.eq.f32.partialorder %v2694_v14, 0.0  ;;  %v1333_v54 = vld [vmem:[#allocation3 + $0x28] sm:$0xff] }
 0x370   :  { %v1181_v25 = vmul.f32 %v1853_v22, %v2632_v36 }
 0x371   :  { %v1220_v62 = vadd.f32 1.0, %v1208_v9  ;;  %v1162_v21 = vsel %vm1161_vm0, %v2630_v43, %v1160_v11 }
 0x372   :  { %v1855_v1 = vpop.eup %1854  ;;  %v1165_v23 = vsel %vm1163_vm3, %v1164_v13, %v1162_v21  ;;  %v1183_v27 = vsel %vm1182_vm5, %v2632_v36, %v1181_v25 }
 0x373   :  { %v1857_v7 = vpop.eup %1856  ;;  %v1232_v17 = vmax.f32 %v1220_v62, 0.0  ;;  %v1207_v33 = vsub.f32 %v2657_v39, %v1165_v23  ;;  %v1186_v32 = vsel %vm1184_vm7, %v1185_v19, %v1183_v27  ;;  %v1174_v53 = vmul.f32 %v1855_v1, %v2651_v58 }
 0x374   :  { %v1210_v4 = vsub.f32 %v1090_v38, %v1186_v32  ;;  %v1195_v37 = vmul.f32 %v1857_v7, %v2653_v42 }
 0x375   :  { %v1307_v43 = vadd.f32 %v1295_v57, %v1232_v17  ;;  %v1219_v24 = vadd.f32 1.0, %v1207_v33  ;;  %v1176_v36 = vsel %vm1175_vm9, %v2651_v58, %v1174_v53  ;;  %v1192_v58 = vand.u32 2147483648, %v2676_v59 }
 0x376   :  { %v1859_v41 = vpop.eup %1858  ;;  %v1222_v15 = vadd.f32 1.0, %v1210_v4  ;;  %v1179_v8 = vsel %vm1177_vm11, %v1178_v56, %v1176_v36  ;;  %v1197_v47 = vsel %vm1196_vm4, %v2653_v42, %v1195_v37  ;;  %v1349_v42 = vsel %vm380_vm2, %v1333_v54, 0.0 }
 0x377   :  { %1320 = vst.msk [vmem:[#allocation3 + $0x38] sm:$0xff] %vm380_vm2, %v1307_v43  ;;  %v1231_v6 = vmax.f32 %v1219_v24, 0.0  ;;  %v1209_v44 = vsub.f32 %v2686_v0, %v1179_v8  ;;  %v1188_v39 = vmul.f32 %v1859_v41, %v2676_v59  ;;  %v1346_v0 = vadd.f32 %v2661_v49, %v2696_v18 }
 0x378   :  { %v1861_v45 = vpop.eup %1860  ;;  %v1234_v46 = vmax.f32 %v1222_v15, 0.0 }
 0x379   :  { %v1306_v51 = vadd.f32 %v1294_v50, %v1231_v6  ;;  %v1221_v34 = vadd.f32 1.0, %v1209_v44  ;;  %v1190_v31 = vsel %vm1189_vm6, %v2676_v59, %v1188_v39  ;;  %v1099_v52 = vmul.f32 %v1861_v45, %v2694_v14 }
 0x37a   :  { %v1309_v20 = vadd.f32 %v1297_v16, %v1234_v46  ;;  %v1193_v28 = vsel %vm1191_vm8, %v1192_v58, %v1190_v31  ;;  %v1200_v59 = vsel %vm1198_vm14, %v1199_v55, %v1197_v47  ;;  %v1348_v22 = vadd.f32 %v1347_v40, %v1346_v0 }
 0x37b   :  { %1319 = vst.msk [vmem:[#allocation3 + $0x30] sm:$0xff] %vm380_vm2, %v1306_v51  ;;  %v1233_v60 = vmax.f32 %v1221_v34, 0.0  ;;  %v1211_v12 = vsub.f32 %v1097_v29, %v1193_v28  ;;  %v1101_v61 = vsel %vm1100_vm10, %v2694_v14, %v1099_v52  ;;  %v1299_v14 = vld [vmem:[#allocation3 + $0x58] sm:$0xff] }
 0x37c   :  { %1322 = vst.msk [vmem:[#allocation3 + $0x48] sm:$0xff] %vm380_vm2, %v1309_v20  ;;  %v1104_v63 = vsel %vm1102_vm12, %v1103_v10, %v1101_v61  ;;  %v1350_v38 = vadd.f32 %v1349_v42, %v1348_v22 }
 0x37d   :  { %v1308_v26 = vadd.f32 %v1296_v30, %v1233_v60  ;;  %v1223_v2 = vadd.f32 1.0, %v1211_v12  ;;  %v1212_v3 = vsub.f32 %v1104_v63, %v1200_v59 }
 0x37e   :  { %v1335_v19 = vld [vmem:[#allocation3 + $0x38] sm:$0xff] }
 0x37f   :  { %1321 = vst.msk [vmem:[#allocation3 + $0x40] sm:$0xff] %vm380_vm2, %v1308_v26  ;;  %v1235_v5 = vmax.f32 %v1223_v2, 0.0  ;;  %v1224_v9 = vadd.f32 1.0, %v1212_v3  ;;  %v1353_v21 = vsel %vm380_vm2, %v1335_v19, 0.0 }
 0x381   :  { %v1310_v11 = vadd.f32 %v1298_v48, %v1235_v5  ;;  %v1236_v13 = vmax.f32 %v1224_v9, 0.0 }
 0x382   :  { %v1334_v25 = vld [vmem:[#allocation3 + $0x30] sm:$0xff] }
 0x383   :  { %1323 = vst.msk [vmem:[#allocation3 + $0x50] sm:$0xff] %vm380_vm2, %v1310_v11  ;;  %v1311_v49 = vadd.f32 %v1299_v14, %v1236_v13  ;;  %v1351_v18 = vsel %vm380_vm2, %v1334_v25, 0.0  ;;  %v1337_v29 = vld [vmem:[#allocation3 + $0x48] sm:$0xff] }
 0x384   :  { %v1352_v62 = vadd.f32 %v1351_v18, %v1350_v38  ;;  %v1357_v7 = vsel %vm380_vm2, %v1337_v29, 0.0 }
 0x385   :  { %1324 = vst.msk [vmem:[#allocation3 + $0x58] sm:$0xff] %vm380_vm2, %v1311_v49 }
 0x386   :  { %v1336_v1 = vld [vmem:[#allocation3 + $0x40] sm:$0xff]  ;;  %v1354_v57 = vadd.f32 %v1353_v21, %v1352_v62 }
 0x387   :  { %v1355_v23 = vsel %vm380_vm2, %v1336_v1, 0.0 }
 0x388   :  { %v1356_v27 = vadd.f32 %v1355_v23, %v1354_v57 }
 0x38a   :  { %v1338_v17 = vld [vmem:[#allocation3 + $0x50] sm:$0xff]  ;;  %v1358_v33 = vadd.f32 %v1357_v7, %v1356_v27 }
 0x38b   :  { %v1359_v32 = vsel %vm380_vm2, %v1338_v17, 0.0 }
 0x38c   :  { %v1339_v53 = vld [vmem:[#allocation3 + $0x58] sm:$0xff]  ;;  %v1360_v35 = vadd.f32 %v1359_v32, %v1358_v33 }
 0x38d   :  { %v1361_v4 = vsel %vm380_vm2, %v1339_v53, 0.0 }
 0x38e   :  { %v1362_v56 = vadd.f32 %v1361_v4, %v1360_v35 }
 0x390   :  { %1363 = vadd.xlane.f32.xlu1 %v1362_v56 }
 0x41d   :  { %v1364_v37 = vpop.xlane.xlu1 %1363 }
 0x41e   :  { %v1365_v43 = vrot.slane %v1364_v37, 4 }
 0x420   :  { %v1366_v24 = vadd.f32 %v1365_v43, %v1364_v37 }
 0x422   :  { %v1367_v36 = vrot.slane %v1366_v24, 2 }
 0x424   :  { %v1368_v41 = vadd.f32 %v1367_v36, %v1366_v24 }
 0x426   :  { %v1369_v50 = vrot.slane %v1368_v41, 1 }
 0x428   :  { %v1370_v15 = vadd.f32 %v1369_v50, %v1368_v41 }
 0x42a   :  { %1806 = vpush %v1370_v15 }
 0x45b   :  { %s1807_s3 = spop %1806 }
 0x45c   :  { %s1374_s9 = smul.f32 0.010416667, %s1807_s3 }
 0x45e   :  { %1376 = sst [smem:[#allocation4]] %s1374_s9 }
 0x45f   :  { %1871 = shalt.err (!%p1868_p2)
}
 0x460   :  { %s1877_s17 = smov [#allocation4]  }
 0x461   :  { %1384 = dma.smem_to_hbm %s1877_s17, 16, %s2784_s4, [#allocation5]  }
 0x462   :  { %1872 = dma.done.wait [#allocation5], 16  }
 0x463   :  { %1873 = vsyncadd [#allocation5], 4294967280 }
 0x464   :  { %1388 = sfence }
 0x465   :  { %1389 = vsyncpa [#allocation5], 1 }

</bundles_post_ra>
